<compile_context>
chip_gen: v6e
topology: v6e:2x2x1
jax: 0.10.0
libtpu: 0.0.40
codegen_flags: <defaults>
</compile_context>

<pallas_src>
from functools import partial

import numpy as np
import jax
import jax.numpy as jnp
from jax.experimental import pallas as pl
from jax.experimental.pallas import tpu as pltpu

# ----------------------- small synthetic config -----------------------
SAMPLE_RATE = 1600
N_FFT = 64
HOP = 16
RATIO = N_FFT // HOP             # 4 hop-blocks per frame
N_MELS = 16
F_MIN = 20.0
F_MAX = 800.0
N_FREQ = N_FFT // 2 + 1          # 33
DFT_W = 128                      # lane-padded width of the combined (cos | sin) DFT matrix
IM_OFF = 64                      # imag columns start at lane 64
DENSE_INPUT = 32                 # C: stand-in backbone feature channels
CN = DENSE_INPUT * N_MELS        # 512: lane-dense GeM slab width
NUM_CLASS = 24
EPS = 1e-6                       # GeM / NormalizeMelSpec eps
AMIN = 1e-10                     # AmplitudeToDB amin
TOP_DB = 80.0


# ------------------------------ kernel ---------------------------------
def _fused_kernel(wave_ref, dft_ref, fb_ref, rep_ref, bias_ref, seg_ref,
                  p_ref, hw_ref, hb_ref, out_ref, *, tb, nfr):
    # ---- in-kernel STFT framing (no wrapper gather, no 4x-redundant frames in HBM) ----
    blk = wave_ref[...]                                        # (TB, NBLK, HOP) bf16
    rows = []
    for s in range(tb):                                        # static, tiny
        segs = [blk[s, j:j + nfr, :] for j in range(RATIO)]    # 4 x (NFR, HOP)
        rows.append(jnp.concatenate(segs, axis=1))             # (NFR, N_FFT)
    frames = jnp.concatenate(rows, axis=0)                     # (TB*NFR, N_FFT) bf16

    # ---- MelSpectrogram(normalized=True, power=2): two lane-dense MXU matmuls ----
    # Hann window and sqrt(1/sum(win^2)) are folded into dft_ref (cos in lanes [0:33],
    # -sin in lanes [64:97]); fb_ref stacks the mel filterbank twice so one matmul does
    # re^2 + im^2 AND the mel projection.
    d = jnp.dot(frames, dft_ref[...], preferred_element_type=jnp.float32)   # (TB*NFR, 128)
    sq = d * d                                                               # re^2 | im^2
    # deliberate bf16 quantization of the power spectrum (error masked by dB compression)
    mel = jnp.dot(sq.astype(jnp.bfloat16), fb_ref[...],
                  preferred_element_type=jnp.float32)                        # (TB*NFR, N_MELS)

    p = p_ref[0, 0]
    inv_p = 1.0 / p
    inv_n = 1.0 / (nfr * N_MELS)
    nm1 = float(nfr * N_MELS - 1)

    pooled_rows = []
    for s in range(tb):                                        # per-sample stats / GeM tail
        m_s = mel[s * nfr:(s + 1) * nfr, :]                    # (NFR, N_MELS) static slice

        # ---- AmplitudeToDB(top_db=80) ----
        # TODO(synk): torchaudio clamps against the max over the WHOLE batch; here the clamp
        # is per sample to keep grid steps independent (difference is masked by normalization).
        db = 10.0 * jnp.log10(jnp.maximum(m_s, AMIN))
        db = jnp.maximum(db, jnp.max(db, keepdims=True) - TOP_DB)

        # ---- NormalizeMelSpec (per sample) ----
        mean = jnp.mean(db, keepdims=True)
        cen = db - mean
        var = jnp.sum(cen * cen, keepdims=True) / nm1          # torch.std -> unbiased
        xstd = cen * (1.0 / (jnp.sqrt(var) + EPS))
        nmin = jnp.min(xstd, keepdims=True)
        nmax = jnp.max(xstd, keepdims=True)
        rng = nmax - nmin
        v = (xstd - nmin) * (1.0 / jnp.maximum(rng, EPS))      # clip(xstd,nmin,nmax) is identity
        xnorm = jnp.where(rng > EPS, v, 0.0)                   # (NFR, N_MELS)

        # ---- backbone stand-in (1x1 conv 1->C + ReLU) + GeM, lane-dense ----
        # TODO(synk): full timm resnet34 backbone is an external pretrained model and is not
        # translated; deterministic 1x1-conv(1->C)+ReLU stand-in instead.
        # Replication matmul puts the channel broadcast on the MXU: column c*N_MELS+m of z is
        # bb_w[c]*xnorm[:, m] + bb_b[c] -> all VPU/EUP GeM work runs at full lane occupancy.
        z = jnp.dot(xnorm.astype(jnp.bfloat16), rep_ref[...],
                    preferred_element_type=jnp.float32) + bias_ref[...]      # (NFR, CN)
        # relu then clamp(min=eps) == max(z, eps)  (eps > 0), then pow(p)
        g = jnp.exp(p * jnp.log(jnp.maximum(z, EPS)))                        # (NFR, CN)
        # per-channel 16-lane segment sum on the MXU, then frame sum (sublane reduce)
        gc = jnp.dot(g, seg_ref[...], preferred_element_type=jnp.float32)    # (NFR, C)
        ch = jnp.sum(gc, axis=0, keepdims=True)                              # (1, C)
        pooled_rows.append(jnp.exp(inv_p * jnp.log(ch * inv_n)))             # GeM mean^(1/p)

    # eval-mode dropouts are identity => sum(head(drop(x)))/5 == head(x); one matmul per step
    pooled = jnp.concatenate(pooled_rows, axis=0)                            # (TB, C)
    out_ref[...] = (jnp.dot(pooled, hw_ref[...], preferred_element_type=jnp.float32)
                    + hb_ref[...])                                           # (TB, NUM_CLASS)


# ------------------------------ wrapper ---------------------------------
def fused_forward_pallas(wave_blocks, params, tb):
    B, nblk, hop = wave_blocks.shape
    nfr = nblk - (RATIO - 1)                                   # frames per sample
    C, NC = params["head_w_t"].shape
    assert B % tb == 0
    gsteps = B // tb                                           # keep >=2 steps for v7x megacore

    out = pl.pallas_call(
        partial(_fused_kernel, tb=tb, nfr=nfr),
        out_shape=jax.ShapeDtypeStruct((gsteps, tb, NC), jnp.float32),
        grid_spec=pltpu.PrefetchScalarGridSpec(
            num_scalar_prefetch=0,
            grid=(gsteps,),
            in_specs=[
                pl.BlockSpec((tb, nblk, hop), lambda i: (i, 0, 0)),   # hop-blocked wave (bf16)
                pl.BlockSpec((N_FFT, DFT_W), lambda i: (0, 0)),       # fused window*DFT (bf16)
                pl.BlockSpec((DFT_W, N_MELS), lambda i: (0, 0)),      # stacked mel fb (bf16)
                pl.BlockSpec((N_MELS, CN), lambda i: (0, 0)),         # bb_w replication matrix
                pl.BlockSpec((1, CN), lambda i: (0, 0)),              # bb_b tiled row
                pl.BlockSpec((CN, C), lambda i: (0, 0)),              # channel segment-sum selector
                pl.BlockSpec(memory_space=pltpu.MemorySpace.SMEM),    # GeM p parameter (1,1)
                pl.BlockSpec((C, NC), lambda i: (0, 0)),              # head weight^T
                pl.BlockSpec((1, NC), lambda i: (0, 0)),              # head bias
            ],
            out_specs=pl.BlockSpec((None, tb, NC), lambda i: (i, 0, 0)),
        ),
        compiler_params=pltpu.CompilerParams(dimension_semantics=("parallel",)),
    )(wave_blocks, params["dft"], params["mel_fb"], params["rep_w"], params["rep_b"],
      params["seg_sel"], params["gem_p"], params["head_w_t"], params["head_b"])
    return out.reshape(B, NC)                                   # (B, NUM_CLASS)


# ------------------------- parameter setup -----------------------------
def _mel_fbanks(n_freqs, f_min, f_max, n_mels, sample_rate):
    # torchaudio melscale_fbanks (htk scale, norm=None)
    all_freqs = np.linspace(0.0, sample_rate // 2, n_freqs)
    hz2mel = lambda f: 2595.0 * np.log10(1.0 + f / 700.0)
    mel2hz = lambda m: 700.0 * (10.0 ** (m / 2595.0) - 1.0)
    m_pts = np.linspace(hz2mel(f_min), hz2mel(f_max), n_mels + 2)
    f_pts = mel2hz(m_pts)
    f_diff = f_pts[1:] - f_pts[:-1]
    slopes = f_pts[None, :] - all_freqs[:, None]               # (n_freqs, n_mels + 2)
    down = -slopes[:, :-2] / f_diff[:-1]
    up = slopes[:, 2:] / f_diff[1:]
    return np.maximum(0.0, np.minimum(down, up))               # (n_freqs, n_mels)


def init_params():
    n = np.arange(N_FFT)
    window = 0.5 - 0.5 * np.cos(2.0 * np.pi * n / N_FFT)       # periodic hann
    scale = np.sqrt(1.0 / np.sum(window ** 2))                 # normalized=True (power spec)
    k = np.arange(N_FREQ)
    ang = 2.0 * np.pi * np.outer(n, k) / N_FFT
    dft = np.zeros((N_FFT, DFT_W), np.float32)                 # lane-padded combined matrix
    dft[:, :N_FREQ] = np.cos(ang) * window[:, None] * scale
    dft[:, IM_OFF:IM_OFF + N_FREQ] = -np.sin(ang) * window[:, None] * scale

    fb = _mel_fbanks(N_FREQ, F_MIN, F_MAX, N_MELS, SAMPLE_RATE)
    fb_stacked = np.zeros((DFT_W, N_MELS), np.float32)         # stacked: sums re^2 and im^2 rows
    fb_stacked[:N_FREQ, :] = fb
    fb_stacked[IM_OFF:IM_OFF + N_FREQ, :] = fb

    key = jax.random.PRNGKey(0)
    k1, k2, k3, k4 = jax.random.split(key, 4)
    bb_w = np.asarray(0.1 * jax.random.normal(k1, (DENSE_INPUT,), jnp.float32))
    bb_b = np.asarray(0.1 * jax.random.normal(k2, (DENSE_INPUT,), jnp.float32))
    head_w = np.asarray((1.0 / np.sqrt(DENSE_INPUT)) * jax.random.normal(
        k3, (NUM_CLASS, DENSE_INPUT), jnp.float32))
    head_b = np.asarray((1.0 / np.sqrt(DENSE_INPUT)) * jax.random.normal(
        k4, (1, NUM_CLASS), jnp.float32))

    # lane-dense GeM helpers: column c*N_MELS+m of (xnorm @ rep_w + rep_b) equals
    # bb_w[c]*xnorm[:, m] + bb_b[c]; seg_sel sums each 16-lane channel group back to C lanes.
    eye = np.eye(N_MELS, dtype=np.float32)
    rep_w = (bb_w[:, None, None] * eye[None]).transpose(1, 0, 2).reshape(N_MELS, CN)
    rep_b = np.repeat(bb_b, N_MELS)[None, :]                                  # (1, CN)
    seg_sel = np.kron(np.eye(DENSE_INPUT, dtype=np.float32),
                      np.ones((N_MELS, 1), np.float32))                       # (CN, C)

    return dict(
        dft=jnp.asarray(dft, jnp.bfloat16),
        mel_fb=jnp.asarray(fb_stacked, jnp.bfloat16),
        rep_w=jnp.asarray(rep_w, jnp.bfloat16),
        rep_b=jnp.asarray(rep_b, jnp.float32),
        seg_sel=jnp.asarray(seg_sel, jnp.float32),
        gem_p=jnp.full((1, 1), 3.0, jnp.float32),              # GeM p init = 3
        head_w_t=jnp.asarray(head_w.T, jnp.float32),           # (DENSE_INPUT, NUM_CLASS)
        head_b=jnp.asarray(head_b, jnp.float32),
    )


# ----------------------------- forward ---------------------------------
def att_model_forward(params, inputs, tb=2):
    wave = inputs["wave"]                 # (B, T_samples)
    y = inputs["loss_target"]             # (B, NUM_CLASS)
    B, T = wave.shape
    assert T % HOP == 0

    # STFT center=True reflect pad, then hop-block (pure layout ops, no arithmetic, no gather);
    # the overlapping frames themselves are rebuilt inside the kernel.
    pad = N_FFT // 2
    padded = jnp.pad(wave, ((0, 0), (pad, pad)), mode="reflect")       # (B, T + N_FFT)
    nblk = (T + N_FFT) // HOP                                          # = n_frames + RATIO - 1
    wave_blocks = padded.reshape(B, nblk, HOP).astype(jnp.bfloat16)    # bf16 cut of input DMA

    tb = tb if B % tb == 0 else 1
    logit = fused_forward_pallas(wave_blocks, params, tb)              # single fused Pallas call
    return {"logit": logit, "target": y}


if __name__ == "__main__":
    B = 4                                  # packed 2 samples/grid-step -> grid=(2,) (v7x megacore)
    T_SAMPLES = 400
    key = jax.random.PRNGKey(0)
    kw, ky = jax.random.split(key)
    wave = jax.random.normal(kw, (B, T_SAMPLES), jnp.float32)
    loss_target = (jax.random.uniform(ky, (B, NUM_CLASS)) > 0.5).astype(jnp.float32)

    params = init_params()
    out = att_model_forward(params, {"wave": wave, "loss_target": loss_target})
    jax.block_until_ready(out["logit"])
    assert out["logit"].shape == (B, NUM_CLASS)
    assert out["target"].shape == (B, NUM_CLASS)
    assert bool(jnp.all(jnp.isfinite(out["logit"])))
    print("KERNEL_OK")
</pallas_src>

<mosaic_0001>
module attributes {stable_mosaic.version = 11 : i64} {
  func.func @_fused_kernel(%arg0: i32, %arg1: memref<2x29x16xbf16, #tpu.memory_space<vmem>>, %arg2: memref<64x128xbf16, #tpu.memory_space<vmem>>, %arg3: memref<128x16xbf16, #tpu.memory_space<vmem>>, %arg4: memref<16x512xbf16, #tpu.memory_space<vmem>>, %arg5: memref<1x512xf32, #tpu.memory_space<vmem>>, %arg6: memref<512x32xf32, #tpu.memory_space<vmem>>, %arg7: memref<1x1xf32, #tpu.memory_space<smem>>, %arg8: memref<32x24xf32, #tpu.memory_space<vmem>>, %arg9: memref<1x24xf32, #tpu.memory_space<vmem>>, %arg10: memref<1x2x24xf32, #tpu.memory_space<vmem>>) attributes {dimension_semantics = [#tpu.dimension_semantics<parallel>], iteration_bounds = array<i64: 2>, scalar_prefetch = 0 : i64, scratch_operands = 0 : i64, tpu.core_type = #tpu.core_type<tc>, window_params = [{transform_indices = @transform_0, window_bounds = array<i64: 2, 29, 16>}, {pipeline_mode = #tpu.pipeline_mode<synchronous>, transform_indices = @transform_1, window_bounds = array<i64: 64, 128>}, {pipeline_mode = #tpu.pipeline_mode<synchronous>, transform_indices = @transform_2, window_bounds = array<i64: 128, 16>}, {pipeline_mode = #tpu.pipeline_mode<synchronous>, transform_indices = @transform_3, window_bounds = array<i64: 16, 512>}, {pipeline_mode = #tpu.pipeline_mode<synchronous>, transform_indices = @transform_4, window_bounds = array<i64: 1, 512>}, {pipeline_mode = #tpu.pipeline_mode<synchronous>, transform_indices = @transform_5, window_bounds = array<i64: 512, 32>}, {transform_indices = @transform_6, window_bounds = array<i64: 1, 1>}, {pipeline_mode = #tpu.pipeline_mode<synchronous>, transform_indices = @transform_7, window_bounds = array<i64: 32, 24>}, {pipeline_mode = #tpu.pipeline_mode<synchronous>, transform_indices = @transform_8, window_bounds = array<i64: 1, 24>}, {transform_indices = @transform_9, window_bounds = array<i64: 1, 2, 24>}]} {
    %c0 = arith.constant 0 : index
    %c0_0 = arith.constant 0 : index
    %c0_1 = arith.constant 0 : index
    %0 = vector.load %arg1[%c0, %c0_0, %c0_1] : memref<2x29x16xbf16, #tpu.memory_space<vmem>>, vector<2x29x16xbf16>
    %1 = vector.extract_strided_slice %0 {offsets = [0, 0, 0], sizes = [1, 26, 16], strides = [1, 1, 1]} : vector<2x29x16xbf16> to vector<1x26x16xbf16>
    %2 = vector.shape_cast %1 : vector<1x26x16xbf16> to vector<26x16xbf16>
    %3 = vector.extract_strided_slice %0 {offsets = [0, 1, 0], sizes = [1, 26, 16], strides = [1, 1, 1]} : vector<2x29x16xbf16> to vector<1x26x16xbf16>
    %4 = vector.shape_cast %3 : vector<1x26x16xbf16> to vector<26x16xbf16>
    %5 = vector.extract_strided_slice %0 {offsets = [0, 2, 0], sizes = [1, 26, 16], strides = [1, 1, 1]} : vector<2x29x16xbf16> to vector<1x26x16xbf16>
    %6 = vector.shape_cast %5 : vector<1x26x16xbf16> to vector<26x16xbf16>
    %7 = vector.extract_strided_slice %0 {offsets = [0, 3, 0], sizes = [1, 26, 16], strides = [1, 1, 1]} : vector<2x29x16xbf16> to vector<1x26x16xbf16>
    %8 = vector.shape_cast %7 : vector<1x26x16xbf16> to vector<26x16xbf16>
    %9 = tpu.concatenate %2, %4, %6, %8 in 1 : vector<26x16xbf16>, vector<26x16xbf16>, vector<26x16xbf16>, vector<26x16xbf16> -> vector<26x64xbf16>
    %10 = vector.extract_strided_slice %0 {offsets = [1, 0, 0], sizes = [1, 26, 16], strides = [1, 1, 1]} : vector<2x29x16xbf16> to vector<1x26x16xbf16>
    %11 = vector.shape_cast %10 : vector<1x26x16xbf16> to vector<26x16xbf16>
    %12 = vector.extract_strided_slice %0 {offsets = [1, 1, 0], sizes = [1, 26, 16], strides = [1, 1, 1]} : vector<2x29x16xbf16> to vector<1x26x16xbf16>
    %13 = vector.shape_cast %12 : vector<1x26x16xbf16> to vector<26x16xbf16>
    %14 = vector.extract_strided_slice %0 {offsets = [1, 2, 0], sizes = [1, 26, 16], strides = [1, 1, 1]} : vector<2x29x16xbf16> to vector<1x26x16xbf16>
    %15 = vector.shape_cast %14 : vector<1x26x16xbf16> to vector<26x16xbf16>
    %16 = vector.extract_strided_slice %0 {offsets = [1, 3, 0], sizes = [1, 26, 16], strides = [1, 1, 1]} : vector<2x29x16xbf16> to vector<1x26x16xbf16>
    %17 = vector.shape_cast %16 : vector<1x26x16xbf16> to vector<26x16xbf16>
    %18 = tpu.concatenate %11, %13, %15, %17 in 1 : vector<26x16xbf16>, vector<26x16xbf16>, vector<26x16xbf16>, vector<26x16xbf16> -> vector<26x64xbf16>
    %19 = tpu.concatenate %9, %18 in 0 : vector<26x64xbf16>, vector<26x64xbf16> -> vector<52x64xbf16>
    %c0_2 = arith.constant 0 : index
    %c0_3 = arith.constant 0 : index
    %20 = vector.load %arg2[%c0_2, %c0_3] : memref<64x128xbf16, #tpu.memory_space<vmem>>, vector<64x128xbf16>
    %cst = arith.constant dense<0.000000e+00> : vector<52x128xf32>
    %21 = tpu.matmul %19, %20, %cst {dimension_numbers = #tpu.dot_dimension_numbers<[1], [0], [0], [1], [0, 0, 1, 1], [], []>} : vector<52x64xbf16>, vector<64x128xbf16>, vector<52x128xf32> -> vector<52x128xf32>
    %22 = arith.mulf %21, %21 : vector<52x128xf32>
    %23 = arith.truncf %22 : vector<52x128xf32> to vector<52x128xbf16>
    %c0_4 = arith.constant 0 : index
    %c0_5 = arith.constant 0 : index
    %24 = vector.load %arg3[%c0_4, %c0_5] : memref<128x16xbf16, #tpu.memory_space<vmem>>, vector<128x16xbf16>
    %cst_6 = arith.constant dense<0.000000e+00> : vector<52x16xf32>
    %25 = tpu.matmul %23, %24, %cst_6 {dimension_numbers = #tpu.dot_dimension_numbers<[1], [0], [0], [1], [0, 0, 1, 1], [], []>} : vector<52x128xbf16>, vector<128x16xbf16>, vector<52x16xf32> -> vector<52x16xf32>
    %c0_7 = arith.constant 0 : index
    %c0_8 = arith.constant 0 : index
    %26 = memref.load %arg7[%c0_7, %c0_8] : memref<1x1xf32, #tpu.memory_space<smem>>
    %cst_9 = arith.constant 1.000000e+00 : f32
    %27 = arith.divf %cst_9, %26 : f32
    %28 = vector.extract_strided_slice %25 {offsets = [0, 0], sizes = [26, 16], strides = [1, 1]} : vector<52x16xf32> to vector<26x16xf32>
    %cst_10 = arith.constant 1.000000e-10 : f32
    %29 = vector.broadcast %cst_10 : f32 to vector<26x16xf32>
    %30 = arith.maximumf %28, %29 : vector<26x16xf32>
    %31 = math.log %30 : vector<26x16xf32>
    %cst_11 = arith.constant 0.434294492 : f32
    %32 = vector.broadcast %cst_11 : f32 to vector<26x16xf32>
    %33 = arith.mulf %31, %32 : vector<26x16xf32>
    %cst_12 = arith.constant 1.000000e+01 : f32
    %34 = vector.broadcast %cst_12 : f32 to vector<26x16xf32>
    %35 = arith.mulf %34, %33 : vector<26x16xf32>
    %36 = vector.shape_cast %35 : vector<26x16xf32> to vector<1x26x16xf32>
    %cst_13 = arith.constant dense<0xFF800000> : vector<1xf32>
    %37 = vector.multi_reduction <maximumf>, %36, %cst_13 [1, 2] : vector<1x26x16xf32> to vector<1xf32>
    %38 = vector.shape_cast %37 : vector<1xf32> to vector<1x1x1xf32>
    %39 = vector.extract %38[0, 0, 0] : f32 from vector<1x1x1xf32>
    %40 = vector.broadcast %39 : f32 to vector<1x1xf32>
    %cst_14 = arith.constant 8.000000e+01 : f32
    %41 = vector.broadcast %cst_14 : f32 to vector<1x1xf32>
    %42 = arith.subf %40, %41 : vector<1x1xf32>
    %43 = vector.broadcast %42 : vector<1x1xf32> to vector<26x16xf32>
    %44 = arith.maximumf %35, %43 : vector<26x16xf32>
    %45 = vector.shape_cast %44 : vector<26x16xf32> to vector<1x26x16xf32>
    %cst_15 = arith.constant dense<0.000000e+00> : vector<1xf32>
    %46 = vector.multi_reduction <add>, %45, %cst_15 [1, 2] : vector<1x26x16xf32> to vector<1xf32>
    %47 = vector.shape_cast %46 : vector<1xf32> to vector<1x1x1xf32>
    %48 = vector.extract %47[0, 0, 0] : f32 from vector<1x1x1xf32>
    %49 = vector.broadcast %48 : f32 to vector<1x1xf32>
    %cst_16 = arith.constant 4.160000e+02 : f32
    %50 = vector.broadcast %cst_16 : f32 to vector<1x1xf32>
    %51 = arith.divf %49, %50 : vector<1x1xf32>
    %52 = vector.broadcast %51 : vector<1x1xf32> to vector<26x16xf32>
    %53 = arith.subf %44, %52 : vector<26x16xf32>
    %54 = arith.mulf %53, %53 : vector<26x16xf32>
    %55 = vector.shape_cast %54 : vector<26x16xf32> to vector<1x26x16xf32>
    %cst_17 = arith.constant dense<0.000000e+00> : vector<1xf32>
    %56 = vector.multi_reduction <add>, %55, %cst_17 [1, 2] : vector<1x26x16xf32> to vector<1xf32>
    %57 = vector.shape_cast %56 : vector<1xf32> to vector<1x1x1xf32>
    %58 = vector.extract %57[0, 0, 0] : f32 from vector<1x1x1xf32>
    %59 = vector.broadcast %58 : f32 to vector<1x1xf32>
    %cst_18 = arith.constant 4.150000e+02 : f32
    %60 = vector.broadcast %cst_18 : f32 to vector<1x1xf32>
    %61 = arith.divf %59, %60 : vector<1x1xf32>
    %62 = math.sqrt %61 : vector<1x1xf32>
    %cst_19 = arith.constant 9.99999997E-7 : f32
    %63 = vector.broadcast %cst_19 : f32 to vector<1x1xf32>
    %64 = arith.addf %62, %63 : vector<1x1xf32>
    %cst_20 = arith.constant 1.000000e+00 : f32
    %65 = vector.broadcast %cst_20 : f32 to vector<1x1xf32>
    %66 = arith.divf %65, %64 : vector<1x1xf32>
    %67 = vector.broadcast %66 : vector<1x1xf32> to vector<26x16xf32>
    %68 = arith.mulf %53, %67 : vector<26x16xf32>
    %69 = vector.shape_cast %68 : vector<26x16xf32> to vector<1x26x16xf32>
    %cst_21 = arith.constant dense<0x7F800000> : vector<1xf32>
    %70 = vector.multi_reduction <minimumf>, %69, %cst_21 [1, 2] : vector<1x26x16xf32> to vector<1xf32>
    %71 = vector.shape_cast %70 : vector<1xf32> to vector<1x1x1xf32>
    %72 = vector.extract %71[0, 0, 0] : f32 from vector<1x1x1xf32>
    %73 = vector.broadcast %72 : f32 to vector<1x1xf32>
    %74 = vector.shape_cast %68 : vector<26x16xf32> to vector<1x26x16xf32>
    %cst_22 = arith.constant dense<0xFF800000> : vector<1xf32>
    %75 = vector.multi_reduction <maximumf>, %74, %cst_22 [1, 2] : vector<1x26x16xf32> to vector<1xf32>
    %76 = vector.shape_cast %75 : vector<1xf32> to vector<1x1x1xf32>
    %77 = vector.extract %76[0, 0, 0] : f32 from vector<1x1x1xf32>
    %78 = vector.broadcast %77 : f32 to vector<1x1xf32>
    %79 = arith.subf %78, %73 : vector<1x1xf32>
    %80 = vector.broadcast %73 : vector<1x1xf32> to vector<26x16xf32>
    %81 = arith.subf %68, %80 : vector<26x16xf32>
    %cst_23 = arith.constant 9.99999997E-7 : f32
    %82 = vector.broadcast %cst_23 : f32 to vector<1x1xf32>
    %83 = arith.maximumf %79, %82 : vector<1x1xf32>
    %cst_24 = arith.constant 1.000000e+00 : f32
    %84 = vector.broadcast %cst_24 : f32 to vector<1x1xf32>
    %85 = arith.divf %84, %83 : vector<1x1xf32>
    %86 = vector.broadcast %85 : vector<1x1xf32> to vector<26x16xf32>
    %87 = arith.mulf %81, %86 : vector<26x16xf32>
    %cst_25 = arith.constant 9.99999997E-7 : f32
    %88 = vector.broadcast %cst_25 : f32 to vector<1x1xf32>
    %89 = arith.cmpf ogt, %79, %88 : vector<1x1xf32>
    %cst_26 = arith.constant 0.000000e+00 : f32
    %90 = vector.shape_cast %89 : vector<1x1xi1> to vector<1x1xi1>
    %91 = vector.broadcast %90 : vector<1x1xi1> to vector<26x16xi1>
    %92 = vector.broadcast %cst_26 : f32 to vector<26x16xf32>
    %93 = arith.select %91, %87, %92 : vector<26x16xi1>, vector<26x16xf32>
    %94 = arith.truncf %93 : vector<26x16xf32> to vector<26x16xbf16>
    %c0_27 = arith.constant 0 : index
    %c0_28 = arith.constant 0 : index
    %95 = vector.load %arg4[%c0_27, %c0_28] : memref<16x512xbf16, #tpu.memory_space<vmem>>, vector<16x512xbf16>
    %cst_29 = arith.constant dense<0.000000e+00> : vector<26x512xf32>
    %96 = tpu.matmul %94, %95, %cst_29 {dimension_numbers = #tpu.dot_dimension_numbers<[1], [0], [0], [1], [0, 0, 1, 1], [], []>} : vector<26x16xbf16>, vector<16x512xbf16>, vector<26x512xf32> -> vector<26x512xf32>
    %c0_30 = arith.constant 0 : index
    %c0_31 = arith.constant 0 : index
    %97 = vector.load %arg5[%c0_30, %c0_31] : memref<1x512xf32, #tpu.memory_space<vmem>>, vector<1x512xf32>
    %98 = vector.broadcast %97 : vector<1x512xf32> to vector<26x512xf32>
    %99 = arith.addf %96, %98 : vector<26x512xf32>
    %cst_32 = arith.constant 9.99999997E-7 : f32
    %100 = vector.broadcast %cst_32 : f32 to vector<26x512xf32>
    %101 = arith.maximumf %99, %100 : vector<26x512xf32>
    %102 = math.log %101 : vector<26x512xf32>
    %103 = vector.broadcast %26 : f32 to vector<26x512xf32>
    %104 = arith.mulf %103, %102 : vector<26x512xf32>
    %105 = math.exp %104 : vector<26x512xf32>
    %c0_33 = arith.constant 0 : index
    %c0_34 = arith.constant 0 : index
    %106 = vector.load %arg6[%c0_33, %c0_34] : memref<512x32xf32, #tpu.memory_space<vmem>>, vector<512x32xf32>
    %cst_35 = arith.constant dense<0.000000e+00> : vector<26x32xf32>
    %107 = tpu.matmul %105, %106, %cst_35 {dimension_numbers = #tpu.dot_dimension_numbers<[1], [0], [0], [1], [0, 0, 1, 1], [], []>} : vector<26x512xf32>, vector<512x32xf32>, vector<26x32xf32> -> vector<26x32xf32>
    %cst_36 = arith.constant dense<0.000000e+00> : vector<32xf32>
    %108 = vector.multi_reduction <add>, %107, %cst_36 [0] : vector<26x32xf32> to vector<32xf32>
    %109 = vector.shape_cast %108 : vector<32xf32> to vector<1x32xf32>
    %cst_37 = arith.constant 0.00240384624 : f32
    %110 = vector.broadcast %cst_37 : f32 to vector<1x32xf32>
    %111 = arith.mulf %109, %110 : vector<1x32xf32>
    %112 = math.log %111 : vector<1x32xf32>
    %113 = vector.broadcast %27 : f32 to vector<1x32xf32>
    %114 = arith.mulf %113, %112 : vector<1x32xf32>
    %115 = math.exp %114 : vector<1x32xf32>
    %116 = vector.extract_strided_slice %25 {offsets = [26, 0], sizes = [26, 16], strides = [1, 1]} : vector<52x16xf32> to vector<26x16xf32>
    %cst_38 = arith.constant 1.000000e-10 : f32
    %117 = vector.broadcast %cst_38 : f32 to vector<26x16xf32>
    %118 = arith.maximumf %116, %117 : vector<26x16xf32>
    %119 = math.log %118 : vector<26x16xf32>
    %cst_39 = arith.constant 0.434294492 : f32
    %120 = vector.broadcast %cst_39 : f32 to vector<26x16xf32>
    %121 = arith.mulf %119, %120 : vector<26x16xf32>
    %cst_40 = arith.constant 1.000000e+01 : f32
    %122 = vector.broadcast %cst_40 : f32 to vector<26x16xf32>
    %123 = arith.mulf %122, %121 : vector<26x16xf32>
    %124 = vector.shape_cast %123 : vector<26x16xf32> to vector<1x26x16xf32>
    %cst_41 = arith.constant dense<0xFF800000> : vector<1xf32>
    %125 = vector.multi_reduction <maximumf>, %124, %cst_41 [1, 2] : vector<1x26x16xf32> to vector<1xf32>
    %126 = vector.shape_cast %125 : vector<1xf32> to vector<1x1x1xf32>
    %127 = vector.extract %126[0, 0, 0] : f32 from vector<1x1x1xf32>
    %128 = vector.broadcast %127 : f32 to vector<1x1xf32>
    %cst_42 = arith.constant 8.000000e+01 : f32
    %129 = vector.broadcast %cst_42 : f32 to vector<1x1xf32>
    %130 = arith.subf %128, %129 : vector<1x1xf32>
    %131 = vector.broadcast %130 : vector<1x1xf32> to vector<26x16xf32>
    %132 = arith.maximumf %123, %131 : vector<26x16xf32>
    %133 = vector.shape_cast %132 : vector<26x16xf32> to vector<1x26x16xf32>
    %cst_43 = arith.constant dense<0.000000e+00> : vector<1xf32>
    %134 = vector.multi_reduction <add>, %133, %cst_43 [1, 2] : vector<1x26x16xf32> to vector<1xf32>
    %135 = vector.shape_cast %134 : vector<1xf32> to vector<1x1x1xf32>
    %136 = vector.extract %135[0, 0, 0] : f32 from vector<1x1x1xf32>
    %137 = vector.broadcast %136 : f32 to vector<1x1xf32>
    %cst_44 = arith.constant 4.160000e+02 : f32
    %138 = vector.broadcast %cst_44 : f32 to vector<1x1xf32>
    %139 = arith.divf %137, %138 : vector<1x1xf32>
    %140 = vector.broadcast %139 : vector<1x1xf32> to vector<26x16xf32>
    %141 = arith.subf %132, %140 : vector<26x16xf32>
    %142 = arith.mulf %141, %141 : vector<26x16xf32>
    %143 = vector.shape_cast %142 : vector<26x16xf32> to vector<1x26x16xf32>
    %cst_45 = arith.constant dense<0.000000e+00> : vector<1xf32>
    %144 = vector.multi_reduction <add>, %143, %cst_45 [1, 2] : vector<1x26x16xf32> to vector<1xf32>
    %145 = vector.shape_cast %144 : vector<1xf32> to vector<1x1x1xf32>
    %146 = vector.extract %145[0, 0, 0] : f32 from vector<1x1x1xf32>
    %147 = vector.broadcast %146 : f32 to vector<1x1xf32>
    %cst_46 = arith.constant 4.150000e+02 : f32
    %148 = vector.broadcast %cst_46 : f32 to vector<1x1xf32>
    %149 = arith.divf %147, %148 : vector<1x1xf32>
    %150 = math.sqrt %149 : vector<1x1xf32>
    %cst_47 = arith.constant 9.99999997E-7 : f32
    %151 = vector.broadcast %cst_47 : f32 to vector<1x1xf32>
    %152 = arith.addf %150, %151 : vector<1x1xf32>
    %cst_48 = arith.constant 1.000000e+00 : f32
    %153 = vector.broadcast %cst_48 : f32 to vector<1x1xf32>
    %154 = arith.divf %153, %152 : vector<1x1xf32>
    %155 = vector.broadcast %154 : vector<1x1xf32> to vector<26x16xf32>
    %156 = arith.mulf %141, %155 : vector<26x16xf32>
    %157 = vector.shape_cast %156 : vector<26x16xf32> to vector<1x26x16xf32>
    %cst_49 = arith.constant dense<0x7F800000> : vector<1xf32>
    %158 = vector.multi_reduction <minimumf>, %157, %cst_49 [1, 2] : vector<1x26x16xf32> to vector<1xf32>
    %159 = vector.shape_cast %158 : vector<1xf32> to vector<1x1x1xf32>
    %160 = vector.extract %159[0, 0, 0] : f32 from vector<1x1x1xf32>
    %161 = vector.broadcast %160 : f32 to vector<1x1xf32>
    %162 = vector.shape_cast %156 : vector<26x16xf32> to vector<1x26x16xf32>
    %cst_50 = arith.constant dense<0xFF800000> : vector<1xf32>
    %163 = vector.multi_reduction <maximumf>, %162, %cst_50 [1, 2] : vector<1x26x16xf32> to vector<1xf32>
    %164 = vector.shape_cast %163 : vector<1xf32> to vector<1x1x1xf32>
    %165 = vector.extract %164[0, 0, 0] : f32 from vector<1x1x1xf32>
    %166 = vector.broadcast %165 : f32 to vector<1x1xf32>
    %167 = arith.subf %166, %161 : vector<1x1xf32>
    %168 = vector.broadcast %161 : vector<1x1xf32> to vector<26x16xf32>
    %169 = arith.subf %156, %168 : vector<26x16xf32>
    %cst_51 = arith.constant 9.99999997E-7 : f32
    %170 = vector.broadcast %cst_51 : f32 to vector<1x1xf32>
    %171 = arith.maximumf %167, %170 : vector<1x1xf32>
    %cst_52 = arith.constant 1.000000e+00 : f32
    %172 = vector.broadcast %cst_52 : f32 to vector<1x1xf32>
    %173 = arith.divf %172, %171 : vector<1x1xf32>
    %174 = vector.broadcast %173 : vector<1x1xf32> to vector<26x16xf32>
    %175 = arith.mulf %169, %174 : vector<26x16xf32>
    %cst_53 = arith.constant 9.99999997E-7 : f32
    %176 = vector.broadcast %cst_53 : f32 to vector<1x1xf32>
    %177 = arith.cmpf ogt, %167, %176 : vector<1x1xf32>
    %cst_54 = arith.constant 0.000000e+00 : f32
    %178 = vector.shape_cast %177 : vector<1x1xi1> to vector<1x1xi1>
    %179 = vector.broadcast %178 : vector<1x1xi1> to vector<26x16xi1>
    %180 = vector.broadcast %cst_54 : f32 to vector<26x16xf32>
    %181 = arith.select %179, %175, %180 : vector<26x16xi1>, vector<26x16xf32>
    %182 = arith.truncf %181 : vector<26x16xf32> to vector<26x16xbf16>
    %c0_55 = arith.constant 0 : index
    %c0_56 = arith.constant 0 : index
    %183 = vector.load %arg4[%c0_55, %c0_56] : memref<16x512xbf16, #tpu.memory_space<vmem>>, vector<16x512xbf16>
    %cst_57 = arith.constant dense<0.000000e+00> : vector<26x512xf32>
    %184 = tpu.matmul %182, %183, %cst_57 {dimension_numbers = #tpu.dot_dimension_numbers<[1], [0], [0], [1], [0, 0, 1, 1], [], []>} : vector<26x16xbf16>, vector<16x512xbf16>, vector<26x512xf32> -> vector<26x512xf32>
    %c0_58 = arith.constant 0 : index
    %c0_59 = arith.constant 0 : index
    %185 = vector.load %arg5[%c0_58, %c0_59] : memref<1x512xf32, #tpu.memory_space<vmem>>, vector<1x512xf32>
    %186 = vector.broadcast %185 : vector<1x512xf32> to vector<26x512xf32>
    %187 = arith.addf %184, %186 : vector<26x512xf32>
    %cst_60 = arith.constant 9.99999997E-7 : f32
    %188 = vector.broadcast %cst_60 : f32 to vector<26x512xf32>
    %189 = arith.maximumf %187, %188 : vector<26x512xf32>
    %190 = math.log %189 : vector<26x512xf32>
    %191 = vector.broadcast %26 : f32 to vector<26x512xf32>
    %192 = arith.mulf %191, %190 : vector<26x512xf32>
    %193 = math.exp %192 : vector<26x512xf32>
    %c0_61 = arith.constant 0 : index
    %c0_62 = arith.constant 0 : index
    %194 = vector.load %arg6[%c0_61, %c0_62] : memref<512x32xf32, #tpu.memory_space<vmem>>, vector<512x32xf32>
    %cst_63 = arith.constant dense<0.000000e+00> : vector<26x32xf32>
    %195 = tpu.matmul %193, %194, %cst_63 {dimension_numbers = #tpu.dot_dimension_numbers<[1], [0], [0], [1], [0, 0, 1, 1], [], []>} : vector<26x512xf32>, vector<512x32xf32>, vector<26x32xf32> -> vector<26x32xf32>
    %cst_64 = arith.constant dense<0.000000e+00> : vector<32xf32>
    %196 = vector.multi_reduction <add>, %195, %cst_64 [0] : vector<26x32xf32> to vector<32xf32>
    %197 = vector.shape_cast %196 : vector<32xf32> to vector<1x32xf32>
    %cst_65 = arith.constant 0.00240384624 : f32
    %198 = vector.broadcast %cst_65 : f32 to vector<1x32xf32>
    %199 = arith.mulf %197, %198 : vector<1x32xf32>
    %200 = math.log %199 : vector<1x32xf32>
    %201 = vector.broadcast %27 : f32 to vector<1x32xf32>
    %202 = arith.mulf %201, %200 : vector<1x32xf32>
    %203 = math.exp %202 : vector<1x32xf32>
    %204 = tpu.concatenate %115, %203 in 0 : vector<1x32xf32>, vector<1x32xf32> -> vector<2x32xf32>
    %c0_66 = arith.constant 0 : index
    %c0_67 = arith.constant 0 : index
    %205 = vector.load %arg8[%c0_66, %c0_67] : memref<32x24xf32, #tpu.memory_space<vmem>>, vector<32x24xf32>
    %cst_68 = arith.constant dense<0.000000e+00> : vector<2x24xf32>
    %206 = tpu.matmul %204, %205, %cst_68 {dimension_numbers = #tpu.dot_dimension_numbers<[1], [0], [0], [1], [0, 0, 1, 1], [], []>} : vector<2x32xf32>, vector<32x24xf32>, vector<2x24xf32> -> vector<2x24xf32>
    %c0_69 = arith.constant 0 : index
    %c0_70 = arith.constant 0 : index
    %207 = vector.load %arg9[%c0_69, %c0_70] : memref<1x24xf32, #tpu.memory_space<vmem>>, vector<1x24xf32>
    %208 = vector.broadcast %207 : vector<1x24xf32> to vector<2x24xf32>
    %209 = arith.addf %206, %208 : vector<2x24xf32>
    %c0_71 = arith.constant 0 : index
    %c0_72 = arith.constant 0 : index
    %c0_73 = arith.constant 0 : index
    %210 = vector.load %arg10[%c0_71, %c0_72, %c0_73] : memref<1x2x24xf32, #tpu.memory_space<vmem>>, vector<1x2x24xf32>
    %211 = vector.shape_cast %210 : vector<1x2x24xf32> to vector<2x24xf32>
    %212 = vector.shape_cast %209 : vector<2x24xf32> to vector<1x2x24xf32>
    tpu.vector_store %arg10[%c0_71, %c0_72, %c0_73], %212 {strides = array<i32>} : memref<1x2x24xf32, #tpu.memory_space<vmem>>, vector<1x2x24xf32>,
    return
  }
  func.func @transform_0(%arg0: i32) -> (i32, i32, i32) {
    %c0_i32 = arith.constant 0 : i32
    %c0_i32_0 = arith.constant 0 : i32
    %c0_i32_1 = arith.constant 0 : i32
    return %arg0, %c0_i32, %c0_i32_0 : i32, i32, i32
  }
  func.func @transform_1(%arg0: i32) -> (i32, i32) {
    %c0_i32 = arith.constant 0 : i32
    %c0_i32_0 = arith.constant 0 : i32
    %c0_i32_1 = arith.constant 0 : i32
    return %c0_i32, %c0_i32_0 : i32, i32
  }
  func.func @transform_2(%arg0: i32) -> (i32, i32) {
    %c0_i32 = arith.constant 0 : i32
    %c0_i32_0 = arith.constant 0 : i32
    %c0_i32_1 = arith.constant 0 : i32
    return %c0_i32, %c0_i32_0 : i32, i32
  }
  func.func @transform_3(%arg0: i32) -> (i32, i32) {
    %c0_i32 = arith.constant 0 : i32
    %c0_i32_0 = arith.constant 0 : i32
    %c0_i32_1 = arith.constant 0 : i32
    return %c0_i32, %c0_i32_0 : i32, i32
  }
  func.func @transform_4(%arg0: i32) -> (i32, i32) {
    %c0_i32 = arith.constant 0 : i32
    %c0_i32_0 = arith.constant 0 : i32
    %c0_i32_1 = arith.constant 0 : i32
    return %c0_i32, %c0_i32_0 : i32, i32
  }
  func.func @transform_5(%arg0: i32) -> (i32, i32) {
    %c0_i32 = arith.constant 0 : i32
    %c0_i32_0 = arith.constant 0 : i32
    %c0_i32_1 = arith.constant 0 : i32
    return %c0_i32, %c0_i32_0 : i32, i32
  }
  func.func @transform_6(%arg0: i32) -> (i32, i32) {
    %c0_i32 = arith.constant 0 : i32
    %c0_i32_0 = arith.constant 0 : i32
    %c0_i32_1 = arith.constant 0 : i32
    return %c0_i32, %c0_i32_0 : i32, i32
  }
  func.func @transform_7(%arg0: i32) -> (i32, i32) {
    %c0_i32 = arith.constant 0 : i32
    %c0_i32_0 = arith.constant 0 : i32
    %c0_i32_1 = arith.constant 0 : i32
    return %c0_i32, %c0_i32_0 : i32, i32
  }
  func.func @transform_8(%arg0: i32) -> (i32, i32) {
    %c0_i32 = arith.constant 0 : i32
    %c0_i32_0 = arith.constant 0 : i32
    %c0_i32_1 = arith.constant 0 : i32
    return %c0_i32, %c0_i32_0 : i32, i32
  }
  func.func @transform_9(%arg0: i32) -> (i32, i32, i32) {
    %c0_i32 = arith.constant 0 : i32
    %c0_i32_0 = arith.constant 0 : i32
    %c0_i32_1 = arith.constant 0 : i32
    return %arg0, %c0_i32, %c0_i32_0 : i32, i32, i32
  }
}

</mosaic_0001>

<bundles_post_ra>
// kernel: tpu_custom_call.1
= control target key start
LH: loop header
LB: loop body
LE: loop exit
PB: predicated region body
PF: predicated region fallthrough
CT: control target
= control target key end

     0   :  { %s3743_s0 = inlined_call_operand.vmem [shape: bf16[4,29,16], index: 0, kind: input, shape index: {}]   ;;  %s3744_s1 = inlined_call_operand.vmem [shape: bf16[64,128], index: 1, kind: input, shape index: {}]   ;;  %s3745_s2 = inlined_call_operand.vmem [shape: bf16[128,16], index: 2, kind: input, shape index: {}]   ;;  %s3746_s3 = inlined_call_operand.vmem [shape: bf16[16,512], index: 3, kind: input, shape index: {}]   ;;  %s3747_s4 = inlined_call_operand.vmem [shape: f32[1,512], index: 4, kind: input, shape index: {}]   ;;  %s3748_s5 = inlined_call_operand.vmem [shape: f32[512,32], index: 5, kind: input, shape index: {}]   ;;  %s3749_s6 = inlined_call_operand.<no memory space> [shape: f32[1,1], index: 6, kind: input, shape index: {}]   ;;  %s3750_s7 = inlined_call_operand.vmem [shape: f32[32,24], index: 7, kind: input, shape index: {}]   ;;  %s3751_s8 = inlined_call_operand.vmem [shape: f32[1,24], index: 8, kind: input, shape index: {}]   ;;  %s3752_s9 = inlined_call_operand.hbm [shape: f32[2,2,24], index: 9, kind: output, shape index: {}]  }
   0x1   :  { %14 = sst [smem:[#allocation2]] %s3749_s6 }
   0x2   :  { %15 = vsyncpa [#allocation4], 0 }
   0x3   :  { %17 = vsyncpa [#allocation4 + $0x1], 0  ;;  %s2819_s11 = smov 0   ;;  %s2821_s12 = smov 0  }
   0x4   :  { %s2823_s13 = smov 0   ;;  %s2825_s14 = smov 0  }
   0x5 LB: > { %s2840_s6 = sadd.s32 4294967295, %s2757_s14   ;;  %s2143_s15 = sadd.s32 4294967294, %s2757_s14   ;;  %s2757_s14 = sphi %s2825_s14, %s3869_s14   ;;  %s2753_s13 = sphi %s2823_s13, %s3868_s13   ;;  %s2749_s12 = sphi %s2821_s12, %s3867_s12   ;;  %s2745_s11 = sphi %s2819_s11, %s3866_s11  }
   0x6   : > { %s2844_s16 = sadd.s32 1, %s2757_s14   ;;  %s224_s17 = sadd.s32 1, %s2753_s13 }
   0x7   : > { %s221_s18 = ssub.s32 %s2757_s14, %s2844_s16  ;;  %p234_p0 = scmp.ne.s32.totalorder %s2753_s13, %s2749_s12 }
   0x8   : > { %p222_p1 = scmp.eq.s32.totalorder %s221_s18, 0  ;;  %p235_p2 = scmp.eq.s32.totalorder %s2840_s6, 1 }
   0x9   : > { %p240_p3 = scmp.ne.s32.totalorder %s2749_s12, %s2745_s11  ;;  %p241_p4 = scmp.eq.s32.totalorder %s2143_s15, 1 }
   0xa   : > { %s2855_s19 = scalar_select %p222_p1, %s2753_s13, %s224_s17  }
   0xb   : > { %p2857_p5 = por %p235_p2, %p234_p0  ;;  %p2861_p6 = por %p241_p4, %p240_p3 }
   0xc   : > { %p2146_p7 = scmp.ge.s32.totalorder %s2757_s14, 1  ;;  %p293_p8 = scmp.lt.s32.totalorder %s2757_s14, 3 }
   0xe   : > { %p294_p9 = pnand %p2146_p7, %p293_p8 }
  0x10   : > { %297 = sbr.rel (%p294_p9) target bundleno = 2881 (0xb41), region = 56 }
  0x15   : > { %s2148_s22 = sshll.u32 %s2840_s6, 1  ;;  %v2515_v0 = vld [vmem:[%s3744_s1 + $0x18] sm:$0xff]   ;;  %v2516_v1 = vld [vmem:[%s3744_s1 + $0x10] sm:$0xff]   ;;  %vm376_vm0 = vcmask 1046528   ;;  %vm356_vm1 = vsmask.f32 7424 }
  0x16   : > { %p331_p10 = scmp.lt.s32.totalorder %s2148_s22, 3  ;;  %2393 = vmatprep.subr.bf16.mxu0 %v2515_v0  ;;  %s2759_s10 = smov 32   ;;  %v2517_v17 = vld [vmem:[%s3744_s1 + $0x8] sm:$0xff]   ;;  %v2518_v18 = vld [vmem:[%s3744_s1] sm:$0xff]   ;;  %vm384_vm2 = vsmask.f32 6400 }
  0x17   : > { %2394 = vmatpush3.bf16.msra.mxu0 %v2515_v0  ;;  %s2760_s23 = smov 16   ;;  %s2761_s24 = smov 48   ;;  %v2519_v46 = vld [vmem:[%s3745_s2 + $0x38] sm:$0xff]   ;;  %v2520_v47 = vld [vmem:[%s3745_s2 + $0x30] sm:$0xff]   ;;  %v2521_v48 = vld [vmem:[%s3745_s2 + $0x28] sm:$0xff]   ;;  %vm396_vm3 = vcmask 130048  }
  0x18   : > { %s3871_s22 = smov (!%p331_p10, %s2148_s22), 3  ;;  %2395 = vmatprep.subr.bf16.mxu0 %v2516_v1  ;;  %2409 = vmatprep.subr.bf16.mxu1 %v2519_v46  ;;  %v2522_v49 = vld [vmem:[%s3745_s2 + $0x20] sm:$0xff]   ;;  %v2523_v50 = vld [vmem:[%s3745_s2 + $0x18] sm:$0xff]   ;;  %vm406_vm4 = vcmask 392192   ;;  %vm401_vm5 = vcmask 261120   ;;  %vm511_vm6 = vcmask 523264  }
  0x19   : > { %s2191_s27 = sshll.u32 %s3871_s22, 4  ;;  %2410 = vmatpush3.bf16.msra.mxu1 %v2519_v46  ;;  %vm472_vm7 = vcmask 1044480   ;;  %vm752_vm8 = vcmask 123904   ;;  %s725_s28 = sld [smem:[#allocation2]]  ;;  %vm1416_vm11 = vcmask 125952   ;;  %vm1412_vm12 = vcmask 130050  }
  0x1a   : > { %s335_s30 = scalar_lea.vmem %s3743_s0, %s2191_s27  ;;  %2411 = vmatprep.subr.bf16.mxu1 %v2520_v47  ;;  %vm1440_vm13 = vcmask 1045504  }
  0x1b   : > { %v2877_v2 = vld [vmem:[%s335_s30 + $0x8] sm:$0x7f]   ;;  %2396 = vmatpush3.bf16.msra.mxu0 %v2516_v1  ;;  %v2879_v3 = vld [vmem:[%s335_s30] sm:$0xff]   ;;  %v2882_v5 = vld [vmem:[%s335_s30 + $0x10] sm:$0xff]  }
  0x1c   : > { %v378_v4 = vrot.slane %v2877_v2, 1  ;;  %v377_v6 = vrot.slane %v2879_v3, 1  ;;  %v365_v7 = vshll.u32 %v2877_v2, 16  ;;  %v2887_v8 = vld [vmem:[%s335_s30 + $0x18] sm:$0x7f]   ;;  %v440_v9 = vrot.slane %v2882_v5, 1  ;;  %2397 = vmatprep.subr.bf16.mxu0 %v2517_v17 }
  0x1d   : > { %v369_v10 = vshrl.u32 %v2877_v2, 16  ;;  %v422_v11 = vshrl.u32 %v2882_v5, 16  ;;  %v424_v12 = vshll.u32 %v2882_v5, 16  ;;  %v358_v15 = vshrl.u32 %v2879_v3, 16  ;;  %2412 = vmatpush3.bf16.msra.mxu1 %v2520_v47 }
  0x1e   : > { %382 = vrot.lane.b32.xlu0 %v378_v4, %s2759_s10  ;;  %v379_v13 = vsel %vm376_vm0, %v377_v6, %v378_v4  ;;  %v367_v14 = vrot.slane %v365_v7, 1  ;;  %v360_v16 = vshll.u32 %v2879_v3, 16  ;;  %v441_v19 = vrot.slane %v2887_v8, 1  ;;  %2413 = vmatprep.subr.bf16.mxu1 %v2521_v48 }
  0x1f   : > { %380 = vrot.lane.b32.xlu1 %v379_v13, %s2759_s10  ;;  %v388_v20 = vrot.slane %v369_v10, 1  ;;  %v426_v21 = vrot.slane %v424_v12, 1  ;;  %v429_v22 = vshll.u32 %v2887_v8, 16  ;;  %v433_v25 = vshrl.u32 %v2887_v8, 16  ;;  %2398 = vmatpush3.bf16.msra.mxu0 %v2517_v17  ;;  %v2526_v17 = vld [vmem:[%s3745_s2] sm:$0xff]  }
  0x20   : > { %v371_v23 = vor.u32 %v369_v10, %v367_v14  ;;  %v362_v24 = vrot.slane %v360_v16, 1  ;;  %v447_v26 = vrot.slane %v422_v11, 1  ;;  %v442_v27 = vsel %vm376_vm0, %v440_v9, %v441_v19  ;;  %2399 = vmatprep.subr.bf16.mxu0 %v2518_v18 }
  0x21   : > { %v427_v28 = vor.u32 %v426_v21, %v422_v11  ;;  %v431_v29 = vrot.slane %v429_v22, 1  ;;  %v448_v30 = vrot.slane %v424_v12, 2  ;;  %v450_v32 = vrot.slane %v433_v25, 1  ;;  %2414 = vmatpush3.bf16.msra.mxu1 %v2521_v48 }
  0x22   : > { %443 = vrot.lane.b32.xlu0 %v442_v27, %s2759_s10  ;;  %v363_v31 = vor.u32 %v362_v24, %v358_v15  ;;  %v451_v33 = vrot.slane %v429_v22, 2  ;;  %v385_v34 = vrot.slane %v358_v15, 1  ;;  %v386_v37 = vrot.slane %v360_v16, 2  ;;  %2415 = vmatprep.subr.bf16.mxu1 %v2522_v49  ;;  %v2524_v16 = vld [vmem:[%s3745_s2 + $0x10] sm:$0xff]  }
  0x23   : > { %374 = vrot.lane.b32.xlu1 %v371_v23, %s2760_s23  ;;  %v432_v35 = vsel %vm356_vm1, %v427_v28, %v431_v29  ;;  %v449_v36 = vor.u32 %v448_v30, %v447_v26  ;;  %v389_v38 = vrot.slane %v365_v7, 2  ;;  %2400 = vmatpush3.bf16.msra.mxu0 %v2518_v18  ;;  %v435_v45 = vor.u32 %v433_v25, %v431_v29 }
  0x24   : > { %v368_v39 = vsel %vm356_vm1, %v363_v31, %v367_v14  ;;  %v452_v40 = vor.u32 %v451_v33, %v450_v32  ;;  %v387_v41 = vor.u32 %v386_v37, %v385_v34 }
  0x25   : > { %v390_v42 = vor.u32 %v389_v38, %v388_v20  ;;  %2416 = vmatpush3.bf16.msra.mxu1 %v2522_v49 }
  0x26   : > { %436 = vrot.lane.b32.xlu0 %v432_v35, %s2760_s23  ;;  %v453_v43 = vsel %vm384_vm2, %v449_v36, %v452_v40  ;;  %2417 = vmatprep.subr.bf16.mxu1 %v2523_v50 }
  0x27   : > { %372 = vrot.lane.b32.xlu1 %v368_v39, %s2760_s23  ;;  %v391_v44 = vsel %vm384_vm2, %v387_v41, %v390_v42  ;;  %vm1381_vm2 = vcmask 254976  }
  0x29   : > { %2418 = vmatpush3.bf16.msra.mxu1 %v2523_v50 }
  0x2a   : > { %454 = vrot.lane.b32.xlu0 %v453_v43, %s2761_s24  ;;  %2419 = vmatprep.subr.bf16.mxu1 %v2524_v16 }
  0x2b   : > { %392 = vrot.lane.b32.xlu1 %v391_v44, %s2761_s24 }
  0x2d   : > { %2420 = vmatpush3.bf16.msra.mxu1 %v2524_v16 }
  0x2e   : > { %394 = vrot.lane.b32.xlu0 %v390_v42, %s2761_s24 }
  0x2f   : > { %438 = vrot.lane.b32.xlu1 %v435_v45, %s2760_s23 }
  0x32   : > { %445 = vrot.lane.b32.xlu0 %v441_v19, %s2759_s10 }
  0x33   : > { %456 = vrot.lane.b32.xlu1 %v452_v40, %s2761_s24 }
  0x90   : > { %v383_v51 = vpop.permute.xlu0 %382 }
  0x91   : > { %v381_v52 = vpop.permute.xlu1 %380 }
  0x94   : > { %v444_v53 = vpop.permute.xlu0 %443 }
  0x95   : > { %v375_v54 = vpop.permute.xlu1 %374 }
  0x96   : > { %v400_v61 = vsel %vm396_vm3, %v2877_v2, %v375_v54 }
  0x98   : > { %v437_v55 = vpop.permute.xlu0 %436 }
  0x99   : > { %v459_v56 = vsel %vm396_vm3, %v2882_v5, %v437_v55  ;;  %v373_v57 = vpop.permute.xlu1 %372  ;;  %v405_v5 = vsel %vm401_vm5, %v400_v61, %v383_v51 }
  0x9a   : > { %v398_v58 = vsel %vm396_vm3, %v2879_v3, %v373_v57  ;;  %v463_v59 = vsel %vm401_vm5, %v459_v56, %v444_v53 }
  0x9b   : > { %v403_v0 = vsel %vm401_vm5, %v398_v58, %v381_v52 }
  0x9c   : > { %v455_v60 = vpop.permute.xlu0 %454 }
  0x9d   : > { %v467_v62 = vsel %vm406_vm4, %v463_v59, %v455_v60  ;;  %v393_v63 = vpop.permute.xlu1 %392 }
  0x9e   : > { %v408_v1 = vsel %vm406_vm4, %v403_v0, %v393_v63  ;;  %v473_v3 = vrot.slane %v467_v62, 3 }
  0x9f   : > { %2401 = vmatprep.mubr.msk.bf16.mxu0 %vm511_vm6, %v408_v1 }
  0xa0   : > { %v395_v4 = vpop.permute.xlu0 %394 }
  0xa1   : > { %v410_v6 = vsel %vm406_vm4, %v405_v5, %v395_v4  ;;  %v439_v7 = vpop.permute.xlu1 %438 }
  0xa2   : > { %v461_v2 = vsel %vm396_vm3, %v2887_v8, %v439_v7  ;;  %v478_v9 = vsel %vm472_vm7, %v410_v6, %v473_v3  ;;  %v2525_v8 = vld [vmem:[%s3745_s2 + $0x8] sm:$0xff]  }
  0xa3   : > { %2402 = vmatmul.mubr.msk.bf16.vlgmr.msra.gmra.mxu0 %vm511_vm6, %v478_v9  ;;  %2421 = vmatprep.subr.bf16.mxu1 %v2525_v8 }
  0xa4   : > { %v446_v10 = vpop.permute.xlu0 %445  ;;  %2422 = vmatpush3.bf16.msra.mxu1 %v2525_v8 }
  0xa5   : > { %v465_v11 = vsel %vm401_vm5, %v461_v2, %v446_v10  ;;  %v457_v12 = vpop.permute.xlu1 %456  ;;  %2423 = vmatprep.subr.bf16.mxu1 %v2526_v17  ;;  %v2966_v2 = vstv %s725_s28 }
  0xa6   : > { %v469_v13 = vsel %vm406_vm4, %v465_v11, %v457_v12  ;;  %3795 = vst [vmem:[#allocation6_spill] sm:$0xff] %v2966_v2 }
  0xa7   : > { %v474_v14 = vrot.slane %v469_v13, 3 }
  0xa8   : > { %2424 = vmatpush3.bf16.msra.mxu1 %v2526_v17 }
  0xa9   : > { %v475_v15 = vsel %vm472_vm7, %v473_v3, %v474_v14 }
  0xaa   : > { %2405 = vmatprep.mubr.msk.bf16.mxu0 %vm511_vm6, %v475_v15 }
  0xab   : > { %2406 = vmatmul.mubr.msk.bf16.gmra.mxu0 %vm511_vm6, %v474_v14  ;;  %vm2068_vm6 = vcmask 189440  }
 0x163   : > { %v2403_v18 = vpop.f32.mrf.mxu0 }
 0x164   : > { %v588_v25 = vmul.f32 %v2403_v18, %v2403_v18 }
 0x165   : > { %v556_v19 = vpop.f32.mrf.mxu0 }
 0x166   : > { %v586_v23 = vmul.f32 %v556_v19, %v556_v19 }
 0x167   : > { %v2404_v20 = vpop.f32.mrf.mxu0 }
 0x168   : > { %v589_v21 = vmul.f32 %v2404_v20, %v2404_v20 }
 0x169   : > { %v559_v22 = vpop.f32.mrf.mxu0 }
 0x16a   : > { %v587_v24 = vmul.f32 %v559_v22, %v559_v22  ;;  %v594_v28 = vpack.c.bf16 %v589_v21, %v588_v25 }
 0x16b   : > { %v2407_v26 = vpop.f32.mrf.mxu0 }
 0x16c   : > { %v593_v27 = vpack.c.bf16 %v587_v24, %v586_v23  ;;  %v592_v30 = vmul.f32 %v2407_v26, %v2407_v26 }
 0x16d   : > { %v572_v29 = vpop.f32.mrf.mxu0 }
 0x16e   : > { %2425 = vmatprep.mubr.bf16.mxu1 %v593_v27  ;;  %v590_v32 = vmul.f32 %v572_v29, %v572_v29  ;;  %v596_v35 = vpack.c.bf16 %v592_v30, %v592_v30 }
 0x16f   : > { %v2408_v31 = vpop.f32.mrf.mxu0  ;;  %2426 = vmatmul.mubr.bf16.vlgmr.msra.gmra.mxu1 %v594_v28 }
 0x171   : > { %v575_v33 = vpop.f32.mrf.mxu0 }
 0x172   : > { %v591_v34 = vmul.f32 %v575_v33, %v575_v33 }
 0x174   : > { %v595_v36 = vpack.c.bf16 %v591_v34, %v590_v32 }
 0x176   : > { %2429 = vmatprep.mubr.bf16.mxu1 %v595_v36 }
 0x177   : > { %2430 = vmatmul.mubr.bf16.gmra.mxu1 %v596_v35 }
 0x22f   : > { %v2427_v37 = vpop.f32.mrf.mxu1 }
 0x230   : > { %v731_v38 = vmax.f32 %v2427_v37, 1e-10 }
 0x231   : > { %v695_v39 = vpop.f32.mrf.mxu1 }
 0x232   : > { %2533 = vlog2.f32 %v731_v38  ;;  %v729_v40 = vmax.f32 %v695_v39, 1e-10 }
 0x233   : > { %v2428_v41 = vpop.f32.mrf.mxu1 }
 0x234   : > { %2535 = vlog2.f32 %v729_v40  ;;  %v732_v42 = vmax.f32 %v2428_v41, 1e-10 }
 0x235   : > { %v698_v43 = vpop.f32.mrf.mxu1 }
 0x236   : > { %2537 = vlog2.f32 %v732_v42  ;;  %v730_v44 = vmax.f32 %v698_v43, 1e-10 }
 0x237   : > { %v2955_v45 = vpop.f32.mrf.mxu1 }
 0x238   : > { %2539 = vlog2.f32 %v730_v44 }
 0x239   : > { %v2957_v46 = vpop.f32.mrf.mxu1  ;;  %2541 = vrcp.f32 %v2966_v2 }
 0x23b   : > { %v2432_v47 = vpop.f32.mrf.mxu1 }
 0x23f   : > { %v2534_v48 = vpop.eup %2533 }
 0x240   : > { %v738_v49 = vmul.f32 0.6931472, %v2534_v48 }
 0x241   : > { %v2536_v50 = vpop.eup %2535 }
 0x242   : > { %v734_v51 = vmul.f32 0.6931472, %v2536_v50  ;;  %v743_v53 = vmul.f32 0.4342945, %v738_v49 }
 0x243   : > { %v2538_v52 = vpop.eup %2537 }
 0x244   : > { %v741_v54 = vmul.f32 0.4342945, %v734_v51  ;;  %v740_v55 = vmul.f32 0.6931472, %v2538_v52  ;;  %v747_v59 = vmul.f32 10.0, %v743_v53 }
 0x245   : > { %v2540_v56 = vpop.eup %2539 }
 0x246   : > { %v744_v57 = vmul.f32 0.4342945, %v740_v55  ;;  %v736_v58 = vmul.f32 0.6931472, %v2540_v56  ;;  %v745_v60 = vmul.f32 10.0, %v741_v54  ;;  %v751_v4 = vsel %vm396_vm3, %v747_v59, -inf  ;;  %v2542_v9 = vpop.eup %2541 }
 0x247   : > { %2444 = vpush %v2542_v9 }
 0x248   : > { %v2959_v61 = vmul.f32 10.0, %v744_v57  ;;  %v742_v62 = vmul.f32 0.4342945, %v736_v58  ;;  %v749_v1 = vsel %vm396_vm3, %v745_v60, -inf }
 0x24a   : > { %v746_v63 = vmul.f32 10.0, %v742_v62  ;;  %v753_v0 = vsel %vm752_vm8, %v2959_v61, -inf }
 0x24b   : > { %v755_v6 = vmax.f32 %v751_v4, %v753_v0 }
 0x24c   : > { %v750_v3 = vsel %vm396_vm3, %v746_v63, -inf }
 0x24d   : > { %v754_v5 = vmax.f32 %v749_v1, %v750_v3  ;;  %v714_v1 = vpop.f32.mrf.mxu1  ;;  %v1399_v3 = vmax.f32 %v2955_v45, 1e-10 }
 0x24e   : > { %v1398_v4 = vmax.f32 %v714_v1, 1e-10 }
 0x24f   : > { %v756_v7 = vmax.f32 %v754_v5, %v755_v6  ;;  %v1397_v5 = vmax.f32 %v2957_v46, 1e-10 }
 0x251   : > { %757 = vmax.xlane.f32.xlu0 %v756_v7 }
 0x278   : > { %s2969_s29 = spop %2444 }
 0x2da   : > { %v758_v10 = vpop.xlane.xlu0 %757 }
 0x2db   : > { %v759_v11 = vrot.slane %v758_v10, 4 }
 0x2dd   : > { %v760_v12 = vmax.f32 %v758_v10, %v759_v11 }
 0x2df   : > { %v761_v13 = vrot.slane %v760_v12, 2 }
 0x2e1   : > { %v762_v14 = vmax.f32 %v760_v12, %v761_v13 }
 0x2e3   : > { %v763_v15 = vrot.slane %v762_v14, 1 }
 0x2e5   : > { %v764_v16 = vmax.f32 %v762_v14, %v763_v15 }
 0x2e7   : > { %2446 = vpush %v764_v16 }
 0x318   : > { %s2447_s30 = spop %2446 }
 0x319   : > { %v766_v8 = vstv %s2447_s30 }
 0x31a   : > { %v2171_v17 = vadd.f32 -80.0, %v766_v8 }
 0x31c   : > { %v768_v18 = vmax.f32 %v745_v60, %v2171_v17  ;;  %v769_v19 = vmax.f32 %v746_v63, %v2171_v17  ;;  %v770_v20 = vmax.f32 %v747_v59, %v2171_v17  ;;  %v771_v21 = vmax.f32 %v2959_v61, %v2171_v17 }
 0x31e   : > { %v772_v22 = vsel %vm396_vm3, %v768_v18, 0.0  ;;  %v773_v23 = vsel %vm396_vm3, %v769_v19, 0.0  ;;  %v775_v25 = vsel %vm396_vm3, %v770_v20, 0.0  ;;  %v777_v27 = vsel %vm752_vm8, %v771_v21, 0.0 }
 0x31f   : > { %v774_v24 = vadd.f32 %v773_v23, %v772_v22 }
 0x321   : > { %v776_v26 = vadd.f32 %v775_v25, %v774_v24 }
 0x323   : > { %v778_v28 = vadd.f32 %v777_v27, %v776_v26 }
 0x325   : > { %779 = vadd.xlane.f32.xlu1 %v778_v28 }
 0x3ae   : > { %v780_v29 = vpop.xlane.xlu1 %779 }
 0x3af   : > { %v781_v30 = vrot.slane %v780_v29, 4 }
 0x3b1   : > { %v782_v31 = vadd.f32 %v781_v30, %v780_v29 }
 0x3b3   : > { %v783_v32 = vrot.slane %v782_v31, 2 }
 0x3b5   : > { %v784_v33 = vadd.f32 %v783_v32, %v782_v31 }
 0x3b7   : > { %v785_v34 = vrot.slane %v784_v33, 1 }
 0x3b9   : > { %v786_v35 = vadd.f32 %v785_v34, %v784_v33 }
 0x3bb   : > { %2448 = vpush %v786_v35 }
 0x3ec   : > { %s2449_s15 = spop %2448 }
 0x3ed   : > { %v788_v36 = vstv %s2449_s15 }
 0x3ee   : > { %v790_v37 = vmul.f32 0.0024038462, %v788_v36 }
 0x3f0   : > { %v791_v38 = vsub.f32 %v768_v18, %v790_v37  ;;  %v792_v39 = vsub.f32 %v769_v19, %v790_v37  ;;  %v793_v40 = vsub.f32 %v770_v20, %v790_v37  ;;  %v794_v41 = vsub.f32 %v771_v21, %v790_v37 }
 0x3f2   : > { %v795_v42 = vmul.f32 %v791_v38, %v791_v38  ;;  %v796_v43 = vmul.f32 %v792_v39, %v792_v39  ;;  %v797_v44 = vmul.f32 %v793_v40, %v793_v40  ;;  %v798_v47 = vmul.f32 %v794_v41, %v794_v41 }
 0x3f4   : > { %v799_v48 = vsel %vm396_vm3, %v795_v42, 0.0  ;;  %v800_v49 = vsel %vm396_vm3, %v796_v43, 0.0  ;;  %v802_v51 = vsel %vm396_vm3, %v797_v44, 0.0  ;;  %v804_v53 = vsel %vm752_vm8, %v798_v47, 0.0 }
 0x3f5   : > { %v801_v50 = vadd.f32 %v800_v49, %v799_v48  ;;  %v1413_v47 = vsel %vm1412_vm12, %v2959_v61, -inf }
 0x3f7   : > { %v803_v52 = vadd.f32 %v802_v51, %v801_v50  ;;  %v3023_v50 = vld [vmem:[%s3746_s3 + $0x4] ss:$16 sps:$4 sm:$0xff]   ;;  %v3028_v51 = vld [vmem:[%s3746_s3] ss:$16 sps:$4 sm:$0xff]  }
 0x3f8   : > { %953 = vmatprep.subr.bf16.mxu0 %v3023_v50 }
 0x3f9   : > { %v805_v54 = vadd.f32 %v804_v53, %v803_v52  ;;  %954 = vmatpush1.bf16.msra.mxu0 %v3028_v51  ;;  %v3753_v52 = vmov 0   ;;  %v3036_v53 = vld [vmem:[%s3746_s3 + $0xc] ss:$16 sps:$4 sm:$0xff]  }
 0x3fa   : > { %971 = vmatprep.mubr.bf16.mxu0 %v3753_v52  ;;  %1006 = vmatprep.subr.bf16.mxu0 %v3036_v53 }
 0x3fb   : > { %806 = vadd.xlane.f32.xlu0 %v805_v54 }
 0x484   : > { %v807_v55 = vpop.xlane.xlu0 %806 }
 0x485   : > { %v808_v56 = vrot.slane %v807_v55, 4 }
 0x487   : > { %v809_v57 = vadd.f32 %v808_v56, %v807_v55 }
 0x489   : > { %v810_v58 = vrot.slane %v809_v57, 2 }
 0x48b   : > { %v811_v59 = vadd.f32 %v810_v58, %v809_v57 }
 0x48d   : > { %v812_v60 = vrot.slane %v811_v59, 1 }
 0x48f   : > { %v813_v62 = vadd.f32 %v812_v60, %v811_v59 }
 0x491   : > { %2450 = vpush %v813_v62 }
 0x4c2   : > { %s2451_s17 = spop %2450 }
 0x4c3   : > { %v815_v63 = vstv %s2451_s17 }
 0x4c4   : > { %v817_v0 = vmul.f32 0.0024096386, %v815_v63 }
 0x4c6   : > { %2543 = vrsqrt.f32 %v817_v0  ;;  %vm820_vm9 = vcmp.eq.f32.partialorder %v817_v0, inf  ;;  %v823_v9 = vand.u32 2147483648, %v817_v0  ;;  %vm822_vm10 = vcmp.eq.f32.partialorder %v817_v0, 0.0 }
 0x4c7   : > { %2545 = vlog2.f32 %v1399_v3 }
 0x4c8   : > { %2547 = vlog2.f32 %v1398_v4 }
 0x4c9   : > { %2549 = vlog2.f32 %v1397_v5 }
 0x4d3   : > { %v2544_v6 = vpop.eup %2543 }
 0x4d4   : > { %v819_v7 = vmul.f32 %v2544_v6, %v817_v0  ;;  %v2546_v13 = vpop.eup %2545 }
 0x4d5   : > { %v2548_v14 = vpop.eup %2547  ;;  %v1405_v15 = vmul.f32 0.6931472, %v2546_v13 }
 0x4d6   : > { %v821_v10 = vsel %vm820_vm9, %v817_v0, %v819_v7  ;;  %v2550_v16 = vpop.eup %2549  ;;  %v1403_v45 = vmul.f32 0.6931472, %v2548_v14 }
 0x4d7   : > { %v824_v11 = vsel %vm822_vm10, %v823_v9, %v821_v10  ;;  %v1408_v8 = vmul.f32 0.4342945, %v1405_v15  ;;  %v1401_v17 = vmul.f32 0.6931472, %v2550_v16 }
 0x4d8   : > { %v825_v12 = vadd.f32 1e-06, %v824_v11  ;;  %v1407_v18 = vmul.f32 0.4342945, %v1403_v45 }
 0x4d9   : > { %v2982_v46 = vmul.f32 10.0, %v1408_v8  ;;  %v1406_v19 = vmul.f32 0.4342945, %v1401_v17 }
 0x4da   : > { %2551 = vrcp.f32 %v825_v12  ;;  %v2984_v21 = vmul.f32 10.0, %v1407_v18 }
 0x4db   : > { %v2994_v26 = vmul.f32 10.0, %v1406_v19  ;;  %v1417_v27 = vsel %vm1416_vm11, %v2982_v46, -inf }
 0x4dd   : > { %v1414_v42 = vsel %vm396_vm3, %v2994_v26, -inf }
 0x4de   : > { %v1418_v48 = vmax.f32 %v1413_v47, %v1414_v42 }
 0x4e7   : > { %v2552_v20 = vpop.eup %2551 }
 0x4e8   : > { %v2986_v22 = vmul.f32 %v2552_v20, %v791_v38  ;;  %v2988_v23 = vmul.f32 %v2552_v20, %v792_v39  ;;  %v2990_v24 = vmul.f32 %v2552_v20, %v793_v40  ;;  %v2992_v25 = vmul.f32 %v2552_v20, %v794_v41 }
 0x4e9   : > { %v1415_v39 = vsel %vm396_vm3, %v2984_v21, -inf }
 0x4ea   : > { %v849_v28 = vsel %vm396_vm3, %v2986_v22, -inf  ;;  %v850_v29 = vsel %vm396_vm3, %v2988_v23, -inf  ;;  %v851_v30 = vsel %vm396_vm3, %v2990_v24, -inf  ;;  %v852_v31 = vsel %vm752_vm8, %v2992_v25, -inf }
 0x4eb   : > { %v853_v32 = vmax.f32 %v849_v28, %v850_v29  ;;  %v854_v33 = vmax.f32 %v851_v30, %v852_v31  ;;  %v832_v34 = vsel %vm396_vm3, %v2986_v22, inf  ;;  %v833_v35 = vsel %vm396_vm3, %v2988_v23, inf }
 0x4ec   : > { %v834_v36 = vsel %vm396_vm3, %v2990_v24, inf  ;;  %v835_v37 = vsel %vm752_vm8, %v2992_v25, inf  ;;  %v836_v38 = vmin.f32 %v832_v34, %v833_v35  ;;  %v1419_v44 = vmax.f32 %v1415_v39, %v1417_v27 }
 0x4ed   : > { %v855_v40 = vmax.f32 %v853_v32, %v854_v33  ;;  %v837_v41 = vmin.f32 %v834_v36, %v835_v37 }
 0x4ee   : > { %v1420_v49 = vmax.f32 %v1418_v48, %v1419_v44 }
 0x4ef   : > { %856 = vmax.xlane.f32.xlu1 %v855_v40  ;;  %v838_v43 = vmin.f32 %v836_v38, %v837_v41 }
 0x4f1   : > { %839 = vmin.xlane.f32.xlu0 %v838_v43 }
 0x4f5   : > { %1421 = vmax.xlane.f32.xlu0 %v1420_v49  ;;  %v3069_v49 = vld [vmem:[%s3746_s3 + $0x8] ss:$16 sps:$4 sm:$0xff]  }
 0x578   : > { %v857_v54 = vpop.xlane.xlu1 %856 }
 0x579   : > { %v858_v55 = vrot.slane %v857_v54, 4 }
 0x57a   : > { %v840_v56 = vpop.xlane.xlu0 %839 }
 0x57b   : > { %v859_v57 = vmax.f32 %v857_v54, %v858_v55  ;;  %v841_v58 = vrot.slane %v840_v56, 4 }
 0x57d   : > { %v860_v59 = vrot.slane %v859_v57, 2  ;;  %v842_v60 = vmin.f32 %v840_v56, %v841_v58  ;;  %v3094_v58 = vld [vmem:[%s3748_s5 + $0xf0] sm:$0xff] }
 0x57e   : > { %v1422_v62 = vpop.xlane.xlu0 %1421 }
 0x57f   : > { %v843_v63 = vrot.slane %v842_v60, 2  ;;  %v1423_v0 = vrot.slane %v1422_v62, 4  ;;  %v861_v1 = vmax.f32 %v859_v57, %v860_v59  ;;  %v3088_v57 = vld [vmem:[%s3748_s5 + $0x78] sm:$0xff]  ;;  %v3100_v59 = vld [vmem:[%s3748_s5 + $0x70] sm:$0xff] }
 0x581   : > { %v1424_v3 = vmax.f32 %v1422_v62, %v1423_v0  ;;  %v844_v4 = vmin.f32 %v842_v60, %v843_v63  ;;  %v862_v5 = vrot.slane %v861_v1, 1  ;;  %v3106_v60 = vld [vmem:[%s3748_s5 + $0xe8] sm:$0xff]  ;;  %v3118_v63 = vld [vmem:[%s3748_s5 + $0xe0] sm:$0xff] }
 0x582   : > { %v3112_v62 = vld [vmem:[%s3748_s5 + $0x68] sm:$0xff]  ;;  %v3124_v0 = vld [vmem:[%s3748_s5 + $0x60] sm:$0xff] }
 0x583   : > { %v1425_v6 = vrot.slane %v1424_v3, 2  ;;  %v845_v7 = vrot.slane %v844_v4, 1  ;;  %v863_v9 = vmax.f32 %v861_v1, %v862_v5  ;;  %v3130_v1 = vld [vmem:[%s3748_s5 + $0xd8] sm:$0xff]  ;;  %v3148_v5 = vld [vmem:[%s3748_s5 + $0x50] sm:$0xff] }
 0x585   : > { %v846_v10 = vmin.f32 %v844_v4, %v845_v7  ;;  %v1426_v11 = vmax.f32 %v1424_v3, %v1425_v6  ;;  %v3136_v3 = vld [vmem:[%s3748_s5 + $0x58] sm:$0xff]  ;;  %v3142_v4 = vld [vmem:[%s3748_s5 + $0xd0] sm:$0xff]  ;;  %v3154_v6 = vld [vmem:[%s3748_s5 + $0xc8] sm:$0xff] }
 0x586   : > { %v3160_v7 = vld [vmem:[%s3748_s5 + $0x48] sm:$0xff] }
 0x587   : > { %2452 = vpush %v846_v10  ;;  %v1427_v12 = vrot.slane %v1426_v11, 1  ;;  %v3172_v10 = vld [vmem:[%s3748_s5 + $0x40] sm:$0xff] }
 0x588   : > { %2454 = vpush %v863_v9  ;;  %v3166_v9 = vld [vmem:[%s3748_s5 + $0xc0] sm:$0xff] }
 0x589   : > { %v1428_v13 = vmax.f32 %v1426_v11, %v1427_v12  ;;  %v3178_v11 = vld [vmem:[%s3748_s5 + $0xb8] sm:$0xff] }
 0x58a   : > { %3796 = vst [vmem:[#allocation7_spill] sm:$0xff] %v3178_v11  ;;  %v3183_v12 = vld [vmem:[%s3748_s5 + $0x1f8] sm:$0xff] }
 0x58b   : > { %2456 = vpush %v1428_v13  ;;  %v3190_v13 = vld [vmem:[%s3748_s5 + $0x38] sm:$0xff] }
 0x58c   : > { %3797 = vst [vmem:[#allocation8_spill] sm:$0xff] %v3190_v13 }
 0x5b8   : > { %s2453_s26 = spop %2452 }
 0x5b9   : > { %v848_v14 = vstv %s2453_s26  ;;  %s2455_s27 = spop %2454 }
 0x5ba   : > { %v865_v15 = vstv %s2455_s27  ;;  %v867_v38 = vsub.f32 %v2986_v22, %v848_v14  ;;  %v868_v39 = vsub.f32 %v2988_v23, %v848_v14  ;;  %v869_v43 = vsub.f32 %v2990_v24, %v848_v14 }
 0x5bb   : > { %v866_v16 = vsub.f32 %v865_v15, %v848_v14  ;;  %v870_v44 = vsub.f32 %v2992_v25, %v848_v14  ;;  %v3082_v25 = vld [vmem:[%s3748_s5 + $0xf8] sm:$0xff]  ;;  %v3202_v15 = vld [vmem:[%s3748_s5 + $0xb0] sm:$0xff] }
 0x5bc   : > { %s2457_s28 = spop %2456  ;;  %2212 = vmatprep.subr.mxu1 %v3082_v25  ;;  %v3195_v14 = vld [vmem:[%s3748_s5 + $0x178] sm:$0xff]  ;;  %3798 = vst [vmem:[#allocation9_spill] sm:$0xff] %v3202_v15 }
 0x5bd   : > { %v1430_v45 = vstv %s2457_s28  ;;  %v871_v8 = vmax.f32 %v866_v16, 1e-06  ;;  %vm878_vm14 = vcmp.gt.f32.partialorder %v866_v16, 1e-06  ;;  %2213 = vmatpush3.msra.mxu1 %v3088_v57  ;;  %v3207_v16 = vld [vmem:[%s3748_s5 + $0x1f0] sm:$0xff] }
 0x5be   : > { %v2180_v17 = vadd.f32 -80.0, %v1430_v45  ;;  %2214 = vmatprep.subr.mxu1 %v3094_v58  ;;  %v3214_v45 = vld [vmem:[%s3748_s5 + $0x30] sm:$0xff] }
 0x5bf   : > { %2553 = vrcp.f32 %v871_v8  ;;  %2215 = vmatpush3.msra.mxu1 %v3100_v59  ;;  %3799 = vst [vmem:[#allocation10_spill] sm:$0xff] %v3214_v45  ;;  %v3219_v8 = vld [vmem:[%s3748_s5 + $0x170] sm:$0xff] }
 0x5c0   : > { %v3040_v18 = vmax.f32 %v2959_v61, %v2180_v17  ;;  %v3043_v19 = vmax.f32 %v2994_v26, %v2180_v17  ;;  %v3046_v20 = vmax.f32 %v2984_v21, %v2180_v17  ;;  %v3049_v27 = vmax.f32 %v2982_v46, %v2180_v17  ;;  %2216 = vmatprep.subr.mxu1 %v3106_v60  ;;  %v3226_v17 = vld [vmem:[%s3748_s5 + $0xa8] sm:$0xff] }
 0x5c1   : > { %2217 = vmatpush3.msra.mxu1 %v3112_v62  ;;  %3800 = vst [vmem:[#allocation11_spill] sm:$0xff] %v3226_v17 }
 0x5c2   : > { %v1441_v28 = vrot.slane %v3040_v18, 2  ;;  %v1442_v29 = vrot.slane %v3043_v19, 2  ;;  %v1444_v30 = vrot.slane %v3046_v20, 2  ;;  %v1446_v31 = vrot.slane %v3049_v27, 2  ;;  %2218 = vmatprep.subr.mxu1 %v3118_v63 }
 0x5c3   : > { %2219 = vmatpush3.msra.mxu1 %v3124_v0 }
 0x5c4   : > { %v1443_v61 = vsel %vm1440_vm13, %v1441_v28, %v1442_v29  ;;  %v1445_v26 = vsel %vm1440_vm13, %v1442_v29, %v1444_v30  ;;  %v1447_v32 = vsel %vm1440_vm13, %v1444_v30, %v1446_v31  ;;  %v1457_v36 = vsel %vm752_vm8, %v1446_v31, 0.0  ;;  %2220 = vmatprep.subr.mxu1 %v3130_v1  ;;  %v3231_v28 = vld [vmem:[%s3748_s5 + $0x1e8] sm:$0xff]  ;;  %v3250_v31 = vld [vmem:[%s3748_s5 + $0xa0] sm:$0xff] }
 0x5c5   : > { %v1452_v21 = vsel %vm396_vm3, %v1443_v61, 0.0  ;;  %v1453_v46 = vsel %vm396_vm3, %v1445_v26, 0.0  ;;  %v1455_v34 = vsel %vm396_vm3, %v1447_v32, 0.0  ;;  %2221 = vmatpush3.msra.mxu1 %v3136_v3  ;;  %v3238_v29 = vld [vmem:[%s3748_s5 + $0x28] sm:$0xff]  ;;  %3802 = vst [vmem:[#allocation13_spill] sm:$0xff] %v3250_v31  ;;  %v3255_v61 = vld [vmem:[%s3748_s5 + $0x1e0] sm:$0xff] }
 0x5c6   : > { %v1454_v33 = vadd.f32 %v1453_v46, %v1452_v21  ;;  %2222 = vmatprep.subr.mxu1 %v3142_v4  ;;  %3801 = vst [vmem:[#allocation12_spill] sm:$0xff] %v3238_v29  ;;  %v3243_v30 = vld [vmem:[%s3748_s5 + $0x168] sm:$0xff]  ;;  %v3262_v26 = vld [vmem:[%s3748_s5 + $0x20] sm:$0xff]  ;;  %v3274_v21 = vld [vmem:[%s3748_s5 + $0x98] sm:$0xff] }
 0x5c7   : > { %2223 = vmatpush3.msra.mxu1 %v3148_v5  ;;  %3803 = vst [vmem:[#allocation14_spill] sm:$0xff] %v3262_v26  ;;  %v3267_v32 = vld [vmem:[%s3748_s5 + $0x160] sm:$0xff]  ;;  %3804 = vst [vmem:[#allocation15_spill] sm:$0xff] %v3274_v21  ;;  %v3279_v46 = vld [vmem:[%s3748_s5 + $0x1d8] sm:$0xff] }
 0x5c8   : > { %v1456_v35 = vadd.f32 %v1455_v34, %v1454_v33  ;;  %2224 = vmatprep.subr.mxu1 %v3154_v6  ;;  %v3286_v33 = vld [vmem:[%s3748_s5 + $0x18] sm:$0xff] }
 0x5c9   : > { %2225 = vmatpush3.msra.mxu1 %v3160_v7  ;;  %3805 = vst [vmem:[#allocation16_spill] sm:$0xff] %v3286_v33  ;;  %v3291_v34 = vld [vmem:[%s3748_s5 + $0x158] sm:$0xff] }
 0x5ca   : > { %v1458_v37 = vadd.f32 %v1457_v36, %v1456_v35  ;;  %2226 = vmatprep.subr.mxu1 %v3166_v9  ;;  %v3298_v35 = vld [vmem:[%s3748_s5 + $0x90] sm:$0xff] }
 0x5cb   : > { %2227 = vmatpush3.msra.mxu1 %v3172_v10  ;;  %3806 = vst [vmem:[#allocation17_spill] sm:$0xff] %v3298_v35  ;;  %v3303_v36 = vld [vmem:[%s3748_s5 + $0x1d0] sm:$0xff] }
 0x5cc   : > { %1459 = vadd.xlane.f32.xlu1 %v1458_v37  ;;  %v2554_v40 = vpop.eup %2553  ;;  %2228 = vmatprep.subr.mxu1 %v3178_v11  ;;  %v3310_v37 = vld [vmem:[%s3748_s5 + $0x10] sm:$0xff] }
 0x5cd   : > { %v874_v41 = vmul.f32 %v2554_v40, %v867_v38  ;;  %v875_v42 = vmul.f32 %v2554_v40, %v868_v39  ;;  %v876_v22 = vmul.f32 %v2554_v40, %v869_v43  ;;  %v877_v55 = vmul.f32 %v2554_v40, %v870_v44  ;;  %2229 = vmatpush3.msra.mxu1 %v3190_v13  ;;  %v3315_v38 = vld [vmem:[%s3748_s5 + $0x150] sm:$0xff]  ;;  %v3322_v39 = vld [vmem:[%s3748_s5 + $0x88] sm:$0xff]  ;;  %v3346_v43 = vld [vmem:[%s3748_s5 + $0x80] sm:$0xff] }
 0x5ce   : > { %2230 = vmatprep.subr.mxu1 %v3202_v15  ;;  %3807 = vst [vmem:[#allocation18_spill] sm:$0xff] %v3310_v37  ;;  %3808 = vst [vmem:[#allocation19_spill] sm:$0xff] %v3322_v39  ;;  %v3327_v40 = vld [vmem:[%s3748_s5 + $0x1c8] sm:$0xff]  ;;  %v3351_v44 = vld [vmem:[%s3748_s5 + $0x1c0] sm:$0xff] }
 0x5cf   : > { %v881_v47 = vsel %vm878_vm14, %v874_v41, 0.0  ;;  %v882_v48 = vsel %vm878_vm14, %v875_v42, 0.0  ;;  %v883_v23 = vsel %vm878_vm14, %v876_v22, 0.0  ;;  %v884_v24 = vsel %vm878_vm14, %v877_v55, 0.0  ;;  %2231 = vmatpush3.msra.mxu1 %v3214_v45  ;;  %v3334_v41 = vld [vmem:[%s3748_s5 + $0x8] sm:$0xff]  ;;  %3810 = vst [vmem:[#allocation21_spill] sm:$0xff] %v3346_v43 }
 0x5d0   : > { %v885_v54 = vpack.c.bf16 %v882_v48, %v881_v47  ;;  %v886_v56 = vpack.c.bf16 %v884_v24, %v883_v23  ;;  %2232 = vmatprep.subr.mxu1 %v3226_v17  ;;  %3809 = vst [vmem:[#allocation20_spill] sm:$0xff] %v3334_v41  ;;  %v3339_v42 = vld [vmem:[%s3748_s5 + $0x148] sm:$0xff]  ;;  %v3358_v47 = vld [vmem:[%s3748_s5] sm:$0xff]  ;;  %v3376_v22 = vld [vmem:[%s3748_s5 + $0x138] sm:$0xff] }
 0x5d1   : > { %2233 = vmatpush3.msra.mxu1 %v3238_v29  ;;  %3811 = vst [vmem:[#allocation22_spill] sm:$0xff] %v3358_v47  ;;  %v3363_v48 = vld [vmem:[%s3748_s5 + $0x140] sm:$0xff]  ;;  %3813 = vst [vmem:[#allocation24_spill] sm:$0xff] %v3376_v22  ;;  %v3383_v55 = vld [vmem:[%s3748_s5 + $0x1b0] sm:$0xff] }
 0x5d2   : > { %2176 = vmatmul.mubr.msk.bf16.vlgmr.msra.gmra.mxu0 %vm396_vm3, %v885_v54  ;;  %2234 = vmatprep.subr.mxu1 %v3250_v31  ;;  %3814 = vst [vmem:[#allocation25_spill] sm:$0xff] %v3383_v55  ;;  %v3389_v23 = vld [vmem:[%s3748_s5 + $0x130] sm:$0xff]  ;;  %v3401_v24 = vld [vmem:[%s3748_s5 + $0x128] sm:$0xff] }
 0x5d3   : > { %981 = vmatprep.mubr.bf16.mxu0 %v3753_v52  ;;  %1007 = vmatpush1.bf16.msra.mxu0 %v3069_v49  ;;  %3815 = vst [vmem:[#allocation26_spill] sm:$0xff] %v3389_v23  ;;  %3817 = vst [vmem:[#allocation28_spill] sm:$0xff] %v3401_v24 }
 0x5d4   : > { %2256 = vmatprep.subr.mxu0 %v3183_v12  ;;  %2235 = vmatpush3.msra.mxu1 %v3262_v26  ;;  %v893_v26 = vlaneseq }
 0x5d5   : > { %2236 = vmatprep.subr.mxu1 %v3274_v21 }
 0x5d6   : > { %2237 = vmatpush3.msra.mxu1 %v3286_v33 }
 0x5d7   : > { %2238 = vmatprep.subr.mxu1 %v3298_v35  ;;  %v3449_v35 = vld [vmem:[%s3748_s5 + $0x108] sm:$0xff] }
 0x5d8   : > { %2239 = vmatpush3.msra.mxu1 %v3310_v37  ;;  %v3443_v37 = vld [vmem:[%s3748_s5 + $0x188] sm:$0xff]  ;;  %3825 = vst [vmem:[#allocation36_spill] sm:$0xff] %v3449_v35 }
 0x5d9   : > { %2240 = vmatprep.subr.mxu1 %v3322_v39  ;;  %v3437_v39 = vld [vmem:[%s3748_s5 + $0x110] sm:$0xff]  ;;  %3824 = vst [vmem:[#allocation35_spill] sm:$0xff] %v3443_v37 }
 0x5da   : > { %2177 = vmatmul.mubr.msk.bf16.gmra.mxu0 %vm396_vm3, %v886_v56  ;;  %2241 = vmatpush3.msra.mxu1 %v3334_v41  ;;  %v3431_v41 = vld [vmem:[%s3748_s5 + $0x190] sm:$0xff]  ;;  %3823 = vst [vmem:[#allocation34_spill] sm:$0xff] %v3437_v39 }
 0x5db   : > { %1024 = vmatprep.mubr.bf16.mxu0 %v3753_v52  ;;  %2242 = vmatprep.subr.mxu1 %v3346_v43  ;;  %v3425_v43 = vld [vmem:[%s3748_s5 + $0x118] sm:$0xff]  ;;  %3822 = vst [vmem:[#allocation33_spill] sm:$0xff] %v3431_v41 }
 0x5dc   : > { %2243 = vmatpush3.msra.mxu1 %v3358_v47  ;;  %v3419_v47 = vld [vmem:[%s3748_s5 + $0x198] sm:$0xff]  ;;  %3821 = vst [vmem:[#allocation32_spill] sm:$0xff] %v3425_v43 }
 0x5dd   : > { %1605 = vmatprep.subr.bf16.mxu1 %v3023_v50  ;;  %v3395_v50 = vld [vmem:[%s3748_s5 + $0x1a8] sm:$0xff]  ;;  %3820 = vst [vmem:[#allocation31_spill] sm:$0xff] %v3419_v47 }
 0x5de   : > { %3816 = vst [vmem:[#allocation27_spill] sm:$0xff] %v3395_v50 }
 0x5e2   : > { %2178 = vmatmul.mubr.msk.bf16.vlgmr.msra.gmra.mxu0 %vm396_vm3, %v885_v54  ;;  %v3370_v54 = vld [vmem:[%s3748_s5 + $0x1b8] sm:$0xff] }
 0x5e3   : > { %1034 = vmatprep.mubr.bf16.mxu0 %v3753_v52  ;;  %2257 = vmatpush3.msra.mxu0 %v3195_v14  ;;  %3812 = vst [vmem:[#allocation23_spill] sm:$0xff] %v3370_v54  ;;  %v3413_v52 = vld [vmem:[%s3748_s5 + $0x120] sm:$0xff] }
 0x5e4   : > { %2258 = vmatprep.subr.mxu0 %v3207_v16  ;;  %3819 = vst [vmem:[#allocation30_spill] sm:$0xff] %v3413_v52 }
 0x5e5   : > { %2259 = vmatpush3.msra.mxu0 %v3219_v8 }
 0x5e6   : > { %2260 = vmatprep.subr.mxu0 %v3231_v28 }
 0x5e7   : > { %2261 = vmatpush3.msra.mxu0 %v3243_v30 }
 0x5e8   : > { %2262 = vmatprep.subr.mxu0 %v3255_v61 }
 0x5e9   : > { %2263 = vmatpush3.msra.mxu0 %v3267_v32 }
 0x5ea   : > { %2179 = vmatmul.mubr.msk.bf16.gmra.mxu0 %vm396_vm3, %v886_v56  ;;  %2264 = vmatprep.subr.mxu0 %v3279_v46  ;;  %v3407_v56 = vld [vmem:[%s3748_s5 + $0x1a0] sm:$0xff] }
 0x5eb   : > { %2265 = vmatpush3.msra.mxu0 %v3291_v34  ;;  %3818 = vst [vmem:[#allocation29_spill] sm:$0xff] %v3407_v56 }
 0x5ec   : > { %2266 = vmatprep.subr.mxu0 %v3303_v36 }
 0x5ed   : > { %2267 = vmatpush3.msra.mxu0 %v3315_v38 }
 0x5ee   : > { %2268 = vmatprep.subr.mxu0 %v3327_v40 }
 0x5ef   : > { %2269 = vmatpush3.msra.mxu0 %v3339_v42 }
 0x5f0   : > { %2270 = vmatprep.subr.mxu0 %v3351_v44 }
 0x5f1   : > { %2271 = vmatpush3.msra.mxu0 %v3363_v48 }
 0x5f2   : > { %2272 = vmatprep.subr.mxu0 %v3370_v54 }
 0x5f3   : > { %2273 = vmatpush3.msra.mxu0 %v3376_v22 }
 0x5f4   : > { %2274 = vmatprep.subr.mxu0 %v3383_v55 }
 0x5f5   : > { %2275 = vmatpush3.msra.mxu0 %v3389_v23 }
 0x5f6   : > { %2276 = vmatprep.subr.mxu0 %v3395_v50 }
 0x5f7   : > { %2277 = vmatpush3.msra.mxu0 %v3401_v24  ;;  %v891_v24 = vld [vmem:[%s3747_s4] sm:$0xf] }
 0x5f8   : > { %2278 = vmatprep.subr.mxu0 %v3407_v56  ;;  %v894_v56 = vshrl.u32 %v893_v26, 7 }
 0x5f9   : > { %2279 = vmatpush3.msra.mxu0 %v3413_v52 }
 0x5fa   : > { %2280 = vmatprep.subr.mxu0 %v3419_v47  ;;  %v895_v31 = vsub.s32 0, %v894_v56  ;;  %v907_v13 = vsub.s32 3, %v894_v56 }
 0x5fb   : > { %2281 = vmatpush3.msra.mxu0 %v3425_v43 }
 0x5fc   : > { %2282 = vmatprep.subr.mxu0 %v3431_v41  ;;  %v3455_v41 = vld [vmem:[%s3748_s5 + $0x180] sm:$0xff]  ;;  %v3468_v29 = vrot.slane %v891_v24, %v895_v31 }
 0x5fd   : > { %2283 = vmatpush3.msra.mxu0 %v3437_v39  ;;  %3826 = vst [vmem:[#allocation37_spill] sm:$0xff] %v3455_v41  ;;  %v3460_v39 = vld [vmem:[%s3748_s5 + $0x100] sm:$0xff] }
 0x5fe   : > { %2284 = vmatprep.subr.mxu0 %v3443_v37  ;;  %3827 = vst [vmem:[#allocation38_spill] sm:$0xff] %v3460_v39 }
 0x5ff   : > { %2285 = vmatpush3.msra.mxu0 %v3449_v35 }
 0x600   : > { %2286 = vmatprep.subr.mxu0 %v3455_v41  ;;  %v899_v41 = vsub.s32 1, %v894_v56 }
 0x601   : > { %2287 = vmatpush3.msra.mxu0 %v3460_v39 }
 0x602   : > { %1658 = vmatprep.subr.bf16.mxu0 %v3036_v53  ;;  %v3470_v39 = vrot.slane %v891_v24, %v899_v41 }
 0x604   : > { %3828 = vst [vmem:[#allocation39_spill] sm:$0xff] %v3470_v39 }
 0x655   : > { %v1460_v37 = vpop.xlane.xlu1 %1459 }
 0x656   : > { %v1461_v43 = vrot.slane %v1460_v37, 4 }
 0x658   : > { %v1462_v33 = vadd.f32 %v1461_v43, %v1460_v37 }
 0x65a   : > { %v1463_v35 = vrot.slane %v1462_v33, 2 }
 0x65c   : > { %v1464_v47 = vadd.f32 %v1463_v35, %v1462_v33 }
 0x65e   : > { %v1465_v21 = vrot.slane %v1464_v47, 1 }
 0x660   : > { %v1466_v52 = vadd.f32 %v1465_v21, %v1464_v47 }
 0x662   : > { %2458 = vpush %v1466_v52 }
 0x692   : > { %v973_v53 = vpop.f32.mrf.mxu0 }
 0x693   : > { %s2459_s30 = spop %2458  ;;  %v974_v37 = vadd.f32 %v973_v53, %v3468_v29 }
 0x694   : > { %v1468_v33 = vstv %s2459_s30  ;;  %v975_v35 = vpop.f32.mrf.mxu0  ;;  %s327_s30 = sand.u32 1, %s2749_s12  }
 0x695   : > { %v1469_v21 = vmul.f32 0.0024038462, %v1468_v33  ;;  %v1045_v52 = vmax.f32 %v974_v37, 1e-06  ;;  %v976_v26 = vadd.f32 %v975_v35, %v3470_v39  ;;  %s2071_s26 = scalar_lea.sflag [#allocation4], %s327_s30 }
 0x696   : > { %v977_v41 = vpop.f32.mrf.mxu0 }
 0x697   : > { %v3475_v43 = vsub.f32 %v3040_v18, %v1469_v21  ;;  %v3478_v47 = vsub.f32 %v3043_v19, %v1469_v21  ;;  %v3481_v31 = vsub.f32 %v3046_v20, %v1469_v21  ;;  %v3484_v50 = vsub.f32 %v3049_v27, %v1469_v21 }
 0x698   : > { %2555 = vlog2.f32 %v1045_v52  ;;  %v1046_v53 = vmax.f32 %v976_v26, 1e-06  ;;  %v978_v33 = vadd.f32 %v977_v41, %v3468_v29  ;;  %v979_v35 = vpop.f32.mrf.mxu0  ;;  %v903_v52 = vsub.s32 2, %v894_v56 }
 0x699   : > { %v1474_v37 = vmul.f32 %v3475_v43, %v3475_v43  ;;  %v1475_v18 = vmul.f32 %v3478_v47, %v3478_v47  ;;  %v1476_v19 = vmul.f32 %v3481_v31, %v3481_v31  ;;  %v1477_v20 = vmul.f32 %v3484_v50, %v3484_v50 }
 0x69a   : > { %2557 = vlog2.f32 %v1046_v53  ;;  %v1049_v27 = vmax.f32 %v978_v33, 1e-06  ;;  %v980_v21 = vadd.f32 %v979_v35, %v3470_v39  ;;  %v983_v17 = vpop.f32.mrf.mxu0 }
 0x69b   : > { %v1482_v26 = vrot.slane %v1474_v37, 2  ;;  %v1483_v41 = vrot.slane %v1475_v18, 2  ;;  %v1485_v23 = vrot.slane %v1476_v19, 2  ;;  %v1487_v45 = vrot.slane %v1477_v20, 2 }
 0x69c   : > { %2559 = vlog2.f32 %v1049_v27  ;;  %v1050_v55 = vmax.f32 %v980_v21, 1e-06  ;;  %v984_v15 = vadd.f32 %v983_v17, %v3468_v29  ;;  %v985_v22 = vpop.f32.mrf.mxu0  ;;  %v3502_v19 = vrot.slane %v891_v24, %v903_v52 }
 0x69d   : > { %v1484_v54 = vsel %vm1440_vm13, %v1482_v26, %v1483_v41  ;;  %v1486_v11 = vsel %vm1440_vm13, %v1483_v41, %v1485_v23  ;;  %v1488_v53 = vsel %vm1440_vm13, %v1485_v23, %v1487_v45  ;;  %v986_v37 = vadd.f32 %v985_v22, %v3470_v39 }
 0x69e   : > { %2561 = vlog2.f32 %v1050_v55  ;;  %v1053_v33 = vmax.f32 %v984_v15, 1e-06  ;;  %v1493_v18 = vsel %vm396_vm3, %v1484_v54, 0.0  ;;  %v987_v35 = vpop.f32.mrf.mxu0  ;;  %v1494_v20 = vsel %vm396_vm3, %v1486_v11, 0.0 }
 0x69f   : > { %v1054_v17 = vmax.f32 %v986_v37, 1e-06  ;;  %v988_v56 = vadd.f32 %v987_v35, %v3468_v29  ;;  %v1495_v27 = vadd.f32 %v1494_v20, %v1493_v18  ;;  %v3506_v26 = vrot.slane %v891_v24, %v907_v13 }
 0x6a0   : > { %2563 = vlog2.f32 %v1053_v33  ;;  %v989_v21 = vpop.f32.mrf.mxu0  ;;  %v1496_v55 = vsel %vm396_vm3, %v1488_v53, 0.0  ;;  %v1498_v52 = vsel %vm752_vm8, %v1487_v45, 0.0 }
 0x6a1   : > { %3829 = vst [vmem:[#allocation40_spill] sm:$0xff] %v3506_v26  ;;  %2565 = vlog2.f32 %v1054_v17  ;;  %v1057_v15 = vmax.f32 %v988_v56, 1e-06  ;;  %v990_v22 = vadd.f32 %v989_v21, %v3470_v39  ;;  %v1497_v54 = vadd.f32 %v1496_v55, %v1495_v27 }
 0x6a2   : > { %v1026_v23 = vpop.f32.mrf.mxu0 }
 0x6a3   : > { %2567 = vlog2.f32 %v1057_v15  ;;  %v1058_v11 = vmax.f32 %v990_v22, 1e-06  ;;  %v1027_v41 = vadd.f32 %v1026_v23, %v3502_v19  ;;  %v1499_v33 = vadd.f32 %v1498_v52, %v1497_v54 }
 0x6a4   : > { %v1028_v18 = vpop.f32.mrf.mxu0 }
 0x6a5   : > { %v2556_v37 = vpop.eup %2555  ;;  %2569 = vlog2.f32 %v1058_v11  ;;  %v1047_v13 = vmax.f32 %v1027_v41, 1e-06  ;;  %v1029_v24 = vadd.f32 %v1028_v18, %v3506_v26  ;;  %1500 = vadd.xlane.f32.xlu0 %v1499_v33 }
 0x6a6   : > { %v1062_v35 = vmul.f32 0.6931472, %v2556_v37  ;;  %v1030_v20 = vpop.f32.mrf.mxu0 }
 0x6a7   : > { %v2558_v53 = vpop.eup %2557  ;;  %2571 = vlog2.f32 %v1047_v13  ;;  %v1048_v45 = vmax.f32 %v1029_v24, 1e-06  ;;  %v1031_v21 = vadd.f32 %v1030_v20, %v3502_v19 }
 0x6a8   : > { %v1094_v17 = vmul.f32 %v1062_v35, %v2966_v2  ;;  %v1064_v56 = vmul.f32 0.6931472, %v2558_v53  ;;  %v1032_v55 = vpop.f32.mrf.mxu0 }
 0x6a9   : > { %v2560_v27 = vpop.eup %2559  ;;  %2573 = vlog2.f32 %v1048_v45  ;;  %v1051_v52 = vmax.f32 %v1031_v21, 1e-06  ;;  %v1033_v11 = vadd.f32 %v1032_v55, %v3506_v26 }
 0x6aa   : > { %v1110_v15 = vmul.f32 1.442695, %v1094_v17  ;;  %v1095_v22 = vmul.f32 %v1064_v56, %v2966_v2  ;;  %v1070_v54 = vmul.f32 0.6931472, %v2560_v27  ;;  %v1036_v41 = vpop.f32.mrf.mxu0 }
 0x6ab   : > { %v2562_v23 = vpop.eup %2561  ;;  %v1052_v13 = vmax.f32 %v1033_v11, 1e-06  ;;  %v1037_v24 = vadd.f32 %v1036_v41, %v3502_v19 }
 0x6ac   : > { %2575 = vpow2.f32 %v1110_v15  ;;  %v1112_v33 = vmul.f32 1.442695, %v1095_v22  ;;  %v1098_v37 = vmul.f32 %v1070_v54, %v2966_v2  ;;  %v1072_v18 = vmul.f32 0.6931472, %v2562_v23  ;;  %v1038_v53 = vpop.f32.mrf.mxu0 }
 0x6ad   : > { %v2564_v35 = vpop.eup %2563  ;;  %2577 = vlog2.f32 %v1051_v52  ;;  %v1055_v27 = vmax.f32 %v1037_v24, 1e-06  ;;  %v1039_v21 = vadd.f32 %v1038_v53, %v3506_v26 }
 0x6ae   : > { %2579 = vpow2.f32 %v1112_v33  ;;  %v1118_v20 = vmul.f32 1.442695, %v1098_v37  ;;  %v1099_v17 = vmul.f32 %v1072_v18, %v2966_v2  ;;  %v1078_v56 = vmul.f32 0.6931472, %v2564_v35  ;;  %v2566_v45 = vpop.eup %2565  ;;  %v1040_v55 = vpop.f32.mrf.mxu0 }
 0x6af   : > { %2581 = vlog2.f32 %v1052_v13  ;;  %v1080_v54 = vmul.f32 0.6931472, %v2566_v45  ;;  %v1056_v52 = vmax.f32 %v1039_v21, 1e-06  ;;  %v1041_v11 = vadd.f32 %v1040_v55, %v3502_v19 }
 0x6b0   : > { %2583 = vpow2.f32 %v1118_v20  ;;  %v1120_v15 = vmul.f32 1.442695, %v1099_v17  ;;  %v1102_v22 = vmul.f32 %v1078_v56, %v2966_v2  ;;  %v2568_v23 = vpop.eup %2567  ;;  %v1042_v41 = vpop.f32.mrf.mxu0 }
 0x6b1   : > { %2585 = vlog2.f32 %v1055_v27  ;;  %v1103_v37 = vmul.f32 %v1080_v54, %v2966_v2  ;;  %v1086_v18 = vmul.f32 0.6931472, %v2568_v23  ;;  %v1059_v13 = vmax.f32 %v1041_v11, 1e-06 }
 0x6b2   : > { %2587 = vpow2.f32 %v1120_v15  ;;  %v1126_v33 = vmul.f32 1.442695, %v1102_v22  ;;  %v2570_v35 = vpop.eup %2569  ;;  %v1043_v24 = vadd.f32 %v1042_v41, %v3506_v26 }
 0x6b3   : > { %2589 = vlog2.f32 %v1056_v52  ;;  %v1128_v53 = vmul.f32 1.442695, %v1103_v37  ;;  %v1106_v20 = vmul.f32 %v1086_v18, %v2966_v2  ;;  %v1088_v17 = vmul.f32 0.6931472, %v2570_v35 }
 0x6b4   : > { %2591 = vpow2.f32 %v1126_v33  ;;  %v2572_v56 = vpop.eup %2571  ;;  %v1060_v45 = vmax.f32 %v1043_v24, 1e-06 }
 0x6b5   : > { %2593 = vlog2.f32 %v1059_v13  ;;  %v1107_v27 = vmul.f32 %v1088_v17, %v2966_v2  ;;  %v1066_v21 = vmul.f32 0.6931472, %v2572_v56  ;;  %v1134_v15 = vmul.f32 1.442695, %v1106_v20 }
 0x6b6   : > { %2595 = vpow2.f32 %v1128_v53  ;;  %v2574_v55 = vpop.eup %2573 }
 0x6b7   : > { %2597 = vlog2.f32 %v1060_v45  ;;  %v1136_v22 = vmul.f32 1.442695, %v1107_v27  ;;  %v1096_v54 = vmul.f32 %v1066_v21, %v2966_v2  ;;  %v1068_v23 = vmul.f32 0.6931472, %v2574_v55 }
 0x6b9   : > { %v2576_v52 = vpop.eup %2575  ;;  %2599 = vpow2.f32 %v1136_v22  ;;  %v1097_v41 = vmul.f32 %v1068_v23, %v2966_v2  ;;  %v1114_v37 = vmul.f32 1.442695, %v1096_v54 }
 0x6ba   : > { %v2578_v11 = vpop.eup %2577  ;;  %2601 = vpow2.f32 %v1134_v15 }
 0x6bb   : > { %v2580_v33 = vpop.eup %2579  ;;  %v1074_v18 = vmul.f32 0.6931472, %v2578_v11  ;;  %v1116_v13 = vmul.f32 1.442695, %v1097_v41 }
 0x6bc   : > { %v2582_v35 = vpop.eup %2581  ;;  %1270 = vmatprep.mubr.f32.mxu1 %v2580_v33 }
 0x6bd   : > { %v2584_v24 = vpop.eup %2583  ;;  %v1100_v53 = vmul.f32 %v1074_v18, %v2966_v2  ;;  %v1076_v20 = vmul.f32 0.6931472, %v2582_v35  ;;  %1271 = vmatmul.mubr.f32.vlgmr.msra.gmra.mxu1 %v2576_v52  ;;  %2603 = vpow2.f32 %v1116_v13 }
 0x6be   : > { %v2586_v17 = vpop.eup %2585  ;;  %1606 = vmatpush1.bf16.msra.mxu1 %v3028_v51  ;;  %2605 = vpow2.f32 %v1114_v37 }
 0x6bf   : > { %v2588_v56 = vpop.eup %2587  ;;  %v1101_v45 = vmul.f32 %v1076_v20, %v2966_v2  ;;  %v1082_v27 = vmul.f32 0.6931472, %v2586_v17  ;;  %2300 = vmatprep.subr.mxu1 %v3082_v25  ;;  %v1122_v55 = vmul.f32 1.442695, %v1100_v53 }
 0x6c0   : > { %v2590_v21 = vpop.eup %2589  ;;  %1275 = vmatprep.mubr.f32.mxu1 %v2588_v56  ;;  %v3830_v56 = vmov 0  }
 0x6c1   : > { %v2592_v15 = vpop.eup %2591  ;;  %v1124_v22 = vmul.f32 1.442695, %v1101_v45  ;;  %v1104_v54 = vmul.f32 %v1082_v27, %v2966_v2  ;;  %v1084_v23 = vmul.f32 0.6931472, %v2590_v21  ;;  %1276 = vmatmul.mubr.f32.gmra.mxu1 %v2584_v24 }
 0x6c2   : > { %v2594_v52 = vpop.eup %2593 }
 0x6c3   : > { %v2596_v11 = vpop.eup %2595  ;;  %2607 = vpow2.f32 %v1124_v22  ;;  %v1105_v51 = vmul.f32 %v1084_v23, %v2966_v2  ;;  %v1090_v41 = vmul.f32 0.6931472, %v2594_v52  ;;  %v1130_v37 = vmul.f32 1.442695, %v1104_v54 }
 0x6c4   : > { %v2598_v33 = vpop.eup %2597  ;;  %2609 = vpow2.f32 %v1122_v55  ;;  %1280 = vmatprep.mubr.f32.mxu1 %v2596_v11 }
 0x6c5   : > { %v1132_v25 = vmul.f32 1.442695, %v1105_v51  ;;  %v1108_v18 = vmul.f32 %v1090_v41, %v2966_v2  ;;  %v1092_v35 = vmul.f32 0.6931472, %v2598_v33  ;;  %1281 = vmatmul.mubr.f32.gmra.mxu1 %v2592_v15 }
 0x6c6   : > { %v2600_v13 = vpop.eup %2599 }
 0x6c7   : > { %2611 = vpow2.f32 %v1132_v25  ;;  %v1109_v53 = vmul.f32 %v1092_v35, %v2966_v2  ;;  %v2602_v24 = vpop.eup %2601  ;;  %v1138_v20 = vmul.f32 1.442695, %v1108_v18  ;;  %1285 = vmatprep.mubr.f32.mxu1 %v2600_v13 }
 0x6c8   : > { %2613 = vpow2.f32 %v1130_v37 }
 0x6c9   : > { %v1140_v17 = vmul.f32 1.442695, %v1109_v53  ;;  %1286 = vmatmul.mubr.f32.gmra.mxu1 %v2602_v24 }
 0x6ca   : > { %1623 = vmatprep.mubr.bf16.mxu1 %v3830_v56  ;;  %v2604_v45 = vpop.eup %2603 }
 0x6cb   : > { %2615 = vpow2.f32 %v1140_v17  ;;  %v2606_v27 = vpop.eup %2605  ;;  %1355 = vmatprep.mubr.f32.mxu0 %v2604_v45 }
 0x6cc   : > { %2617 = vpow2.f32 %v1138_v20  ;;  %1356 = vmatmul.mubr.f32.vlgmr.msra.gmra.mxu0 %v2606_v27 }
 0x6cd   : > { %1659 = vmatpush1.bf16.msra.mxu0 %v3069_v49 }
 0x6ce   : > { %2344 = vmatprep.subr.mxu0 %v3183_v12 }
 0x6d0   : > { %v2608_v21 = vpop.eup %2607 }
 0x6d1   : > { %v2610_v55 = vpop.eup %2609  ;;  %1360 = vmatprep.mubr.f32.mxu0 %v2608_v21 }
 0x6d2   : > { %1361 = vmatmul.mubr.f32.gmra.mxu0 %v2610_v55 }
 0x6d4   : > { %v2612_v15 = vpop.eup %2611 }
 0x6d5   : > { %v2614_v22 = vpop.eup %2613  ;;  %1365 = vmatprep.mubr.f32.mxu0 %v2612_v15 }
 0x6d6   : > { %1366 = vmatmul.mubr.f32.gmra.mxu0 %v2614_v22 }
 0x6d8   : > { %v2616_v54 = vpop.eup %2615 }
 0x6d9   : > { %v2618_v23 = vpop.eup %2617  ;;  %1370 = vmatprep.mubr.f32.mxu0 %v2616_v54 }
 0x6da   : > { %1371 = vmatmul.mubr.f32.gmra.mxu0 %v2618_v23 }
 0x6db   : > { %1676 = vmatprep.mubr.bf16.mxu0 %v3830_v56 }
 0x72e   : > { %v1501_v52 = vpop.xlane.xlu0 %1500 }
 0x72f   : > { %v1502_v11 = vrot.slane %v1501_v52, 4 }
 0x731   : > { %v1503_v51 = vadd.f32 %v1502_v11, %v1501_v52 }
 0x733   : > { %v1504_v49 = vrot.slane %v1503_v51, 2 }
 0x735   : > { %v1505_v41 = vadd.f32 %v1504_v49, %v1503_v51 }
 0x737   : > { %v1506_v12 = vrot.slane %v1505_v41, 1 }
 0x739   : > { %v1507_v33 = vadd.f32 %v1506_v12, %v1505_v41 }
 0x73b   : > { %2460 = vpush %v1507_v33 }
 0x76c   : > { %s2461_s15 = spop %2460 }
 0x76d   : > { %v1509_v37 = vstv %s2461_s15  ;;  %s2147_s15 = sshll.u32 %s327_s30, 1 }
 0x76e   : > { %v1510_v25 = vmul.f32 0.0024096386, %v1509_v37  ;;  %s329_s22 = scalar_lea.vmem [#allocation3], %s2147_s15 }
 0x76f   : > { %s2084_s10 = sshll.u32 %s329_s22, 4  ;;  %s2085_s10 = int_to_ptr.vmem [resolvable:$true] %s2084_s10 }
 0x770   : > { %2619 = vrsqrt.f32 %v1510_v25  ;;  %vm1513_vm15 = vcmp.eq.f32.partialorder %v1510_v25, inf  ;;  %v1516_v24 = vand.u32 2147483648, %v1510_v25  ;;  %vm1515_vm1 = vcmp.eq.f32.partialorder %v1510_v25, 0.0  ;;  %s2697_s27 = scalar_lea.vmem %s2085_s10, 32 }
 0x771   : > { %p2698_p11 = scmp.ne.s32.totalorder %s2085_s10, %s2697_s27 }
 0x773   : > { %p2699_p12 = pnand %p2698_p11, %p2857_p5 }
 0x775   : > { %p2700_p13 = pneg %p2699_p12 }
 0x77d   : > { %v2244_v18 = vpop.f32.mrf.mxu1  ;;  %v2620_v35 = vpop.eup %2619 }
 0x77e   : > { %v1512_v13 = vmul.f32 %v2620_v35, %v1510_v25 }
 0x77f   : > { %v2245_v53 = vpop.f32.mrf.mxu1 }
 0x780   : > { %v2246_v20 = vadd.f32 %v2245_v53, %v2244_v18  ;;  %v1514_v17 = vsel %vm1513_vm15, %v1510_v25, %v1512_v13 }
 0x781   : > { %v2247_v45 = vpop.f32.mrf.mxu1  ;;  %v1517_v27 = vsel %vm1515_vm1, %v1516_v24, %v1514_v17 }
 0x782   : > { %v1518_v21 = vadd.f32 1e-06, %v1517_v27 }
 0x783   : > { %v2248_v55 = vpop.f32.mrf.mxu1 }
 0x784   : > { %v2249_v15 = vadd.f32 %v2248_v55, %v2247_v45  ;;  %2621 = vrcp.f32 %v1518_v21 }
 0x785   : > { %v2250_v22 = vpop.f32.mrf.mxu1 }
 0x787   : > { %v2251_v54 = vpop.f32.mrf.mxu1 }
 0x788   : > { %v2252_v23 = vadd.f32 %v2251_v54, %v2250_v22 }
 0x78c   : > { %v2288_v52 = vpop.f32.mrf.mxu0 }
 0x78e   : > { %v2289_v11 = vpop.f32.mrf.mxu0 }
 0x78f   : > { %v2290_v51 = vadd.f32 %v2289_v11, %v2288_v52 }
 0x791   : > { %v2622_v49 = vpop.eup %2621  ;;  %v1358_v41 = vadd.f32 %v2290_v51, %v2246_v20  ;;  %v2253_v20 = vpop.f32.mrf.mxu1 }
 0x792   : > { %v2291_v12 = vpop.f32.mrf.mxu0  ;;  %v3542_v33 = vmul.f32 %v2622_v49, %v3475_v43  ;;  %v3545_v37 = vmul.f32 %v2622_v49, %v3478_v47  ;;  %v3548_v25 = vmul.f32 %v2622_v49, %v3481_v31  ;;  %v3551_v18 = vmul.f32 %v2622_v49, %v3484_v50 }
 0x793   : > { %v1376_v51 = vsel %vm401_vm5, %v1358_v41, 0.0 }
 0x794   : > { %v2292_v35 = vpop.f32.mrf.mxu0  ;;  %v1542_v53 = vsel %vm1412_vm12, %v3542_v33, -inf  ;;  %v1543_v24 = vsel %vm396_vm3, %v3545_v37, -inf  ;;  %v1544_v43 = vsel %vm396_vm3, %v3548_v25, -inf  ;;  %v1545_v31 = vsel %vm1416_vm11, %v3551_v18, -inf }
 0x795   : > { %v2293_v13 = vadd.f32 %v2292_v35, %v2291_v12  ;;  %v1546_v17 = vmax.f32 %v1542_v53, %v1543_v24  ;;  %v1525_v50 = vsel %vm1412_vm12, %v3542_v33, inf  ;;  %v1526_v45 = vsel %vm396_vm3, %v3545_v37, inf  ;;  %v2254_v53 = vpop.f32.mrf.mxu1 }
 0x796   : > { %v2294_v47 = vpop.f32.mrf.mxu0  ;;  %v1547_v21 = vmax.f32 %v1544_v43, %v1545_v31  ;;  %v1527_v55 = vsel %vm396_vm3, %v3548_v25, inf  ;;  %v1528_v22 = vsel %vm1416_vm11, %v3551_v18, inf  ;;  %v1529_v52 = vmin.f32 %v1525_v50, %v1526_v45 }
 0x797   : > { %v1363_v27 = vadd.f32 %v2293_v13, %v2249_v15  ;;  %v1530_v11 = vmin.f32 %v1527_v55, %v1528_v22  ;;  %v2255_v31 = vadd.f32 %v2254_v53, %v2253_v20 }
 0x798   : > { %v2295_v54 = vpop.f32.mrf.mxu0  ;;  %v1548_v35 = vmax.f32 %v1546_v17, %v1547_v21 }
 0x799   : > { %v1377_v49 = vsel %vm401_vm5, %v1363_v27, 0.0  ;;  %v2296_v12 = vadd.f32 %v2295_v54, %v2294_v47  ;;  %v1531_v15 = vmin.f32 %v1529_v52, %v1530_v11 }
 0x79a   : > { %v1378_v24 = vadd.f32 %v1377_v49, %v1376_v51  ;;  %v2297_v2 = vpop.f32.mrf.mxu0  ;;  %1549 = vmax.xlane.f32.xlu0 %v1548_v35 }
 0x79b   : > { %v1368_v13 = vadd.f32 %v2296_v12, %v2252_v23  ;;  %1532 = vmin.xlane.f32.xlu1 %v1531_v15 }
 0x79c   : > { %v2298_v43 = vpop.f32.mrf.mxu0 }
 0x79d   : > { %v1379_v26 = vsel %vm401_vm5, %v1368_v13, 0.0  ;;  %v2299_v39 = vadd.f32 %v2298_v43, %v2297_v2 }
 0x79e   : > { %v1380_v50 = vadd.f32 %v1379_v26, %v1378_v24 }
 0x79f   : > { %v1373_v45 = vadd.f32 %v2299_v39, %v2255_v31 }
 0x7a1   : > { %v1382_v41 = vsel %vm1381_vm2, %v1373_v45, 0.0 }
 0x7a2   : > { %v3573_v27 = vadd.f32 %v1382_v41, %v1380_v50 }
 0x823   : > { %v1550_v47 = vpop.xlane.xlu0 %1549 }
 0x824   : > { %v1551_v17 = vrot.slane %v1550_v47, 4  ;;  %v1533_v21 = vpop.xlane.xlu1 %1532 }
 0x825   : > { %v1534_v55 = vrot.slane %v1533_v21, 4 }
 0x826   : > { %v1552_v22 = vmax.f32 %v1550_v47, %v1551_v17 }
 0x827   : > { %v1535_v23 = vmin.f32 %v1533_v21, %v1534_v55 }
 0x828   : > { %v1553_v54 = vrot.slane %v1552_v22, 2 }
 0x829   : > { %v1536_v52 = vrot.slane %v1535_v23, 2 }
 0x82a   : > { %v1554_v11 = vmax.f32 %v1552_v22, %v1553_v54 }
 0x82b   : > { %v1537_v20 = vmin.f32 %v1535_v23, %v1536_v52 }
 0x82c   : > { %v1555_v51 = vrot.slane %v1554_v11, 1 }
 0x82d   : > { %v1538_v49 = vrot.slane %v1537_v20, 1 }
 0x82e   : > { %v1556_v2 = vmax.f32 %v1554_v11, %v1555_v51 }
 0x82f   : > { %v1539_v26 = vmin.f32 %v1537_v20, %v1538_v49 }
 0x831   : > { %2462 = vpush %v1539_v26 }
 0x832   : > { %2464 = vpush %v1556_v2 }
 0x862   : > { %s2463_s17 = spop %2462 }
 0x863   : > { %v1541_v39 = vstv %s2463_s17  ;;  %s2465_s18 = spop %2464 }
 0x864   : > { %v1558_v12 = vstv %s2465_s18  ;;  %v1560_v24 = vsub.f32 %v3542_v33, %v1541_v39  ;;  %v1561_v15 = vsub.f32 %v3545_v37, %v1541_v39  ;;  %v1562_v13 = vsub.f32 %v3548_v25, %v1541_v39  ;;  %v3862_v25 = vld [vmem:[#allocation38_spill] sm:$0xff]  ;;  %s2188_s18 = sshll.u32 %s2840_s6, 5  ;;  %s2765_s6 = smov [#allocation3]  }
 0x865   : > { %v1559_v35 = vsub.f32 %v1558_v12, %v1541_v39  ;;  %v1563_v43 = vsub.f32 %v3551_v18, %v1541_v39  ;;  %v3863_v12 = vld [vmem:[#allocation39_spill] sm:$0xff]  ;;  %s3708_s25 = scalar_lea.hbm %s3752_s9, %s2188_s18  ;;  %s2701_s28 = sshll.u32 %s2765_s6, 4  ;;  %s2702_s28 = int_to_ptr.vmem [resolvable:$false] %s2701_s28 }
 0x866   : > { %s2703_s15 = scalar_lea.vmem %s2702_s28, 64  ;;  %p2704_p0 = scmp.lt.s32.totalorder %s2085_s10, %s2702_s28 }
 0x867   : > { %v1564_v53 = vmax.f32 %v1559_v35, 1e-06  ;;  %vm1571_vm4 = vcmp.gt.f32.partialorder %v1559_v35, 1e-06  ;;  %p2705_p1 = scmp.lt.s32.totalorder %s2703_s15, %s2697_s27 }
 0x869   : > { %2623 = vrcp.f32 %v1564_v53  ;;  %v3864_v53 = vld [vmem:[#allocation40_spill] sm:$0xff]  ;;  %p2706_p2 = por %p2705_p1, %p2704_p0 }
 0x86b   : > { %p2707_p3 = pnand %p2706_p2, %p2700_p13 }
 0x876   : > { %v2624_v31 = vpop.eup %2623 }
 0x877   : > { %v1567_v50 = vmul.f32 %v2624_v31, %v1560_v24  ;;  %v1568_v45 = vmul.f32 %v2624_v31, %v1561_v15  ;;  %v1569_v41 = vmul.f32 %v2624_v31, %v1562_v13  ;;  %v1570_v47 = vmul.f32 %v2624_v31, %v1563_v43 }
 0x879   : > { %v1574_v17 = vsel %vm1571_vm4, %v1567_v50, 0.0  ;;  %v1575_v21 = vsel %vm1571_vm4, %v1568_v45, 0.0  ;;  %v1576_v55 = vsel %vm1571_vm4, %v1569_v41, 0.0  ;;  %v1577_v22 = vsel %vm1571_vm4, %v1570_v47, 0.0 }
 0x87a   : > { %v1578_v23 = vpack.c.bf16 %v1575_v21, %v1574_v17  ;;  %v1579_v54 = vpack.c.bf16 %v1577_v22, %v1576_v55 }
 0x87c   : > { %v1582_v52 = vrot.slane %v1578_v23, 1  ;;  %v1583_v33 = vrot.slane %v1579_v54, 1 }
 0x87e   : > { %v1584_v37 = vsel %vm376_vm0, %v1582_v52, %v1583_v33  ;;  %vm2764_vm0 = vmmov 0  }
 0x87f   : > { %2181 = vmatmul.mubr.msk.bf16.vlgmr.msra.gmra.mxu1 %vm396_vm3, %v1584_v37  ;;  %2183 = vmatmul.mubr.msk.bf16.vlgmr.msra.gmra.mxu0 %vm396_vm3, %v1584_v37 }
 0x880   : > { %1633 = vmatprep.mubr.bf16.mxu1 %v3830_v56  ;;  %1686 = vmatprep.mubr.bf16.mxu0 %v3830_v56  ;;  %v3861_v56 = vld [vmem:[#allocation22_spill] sm:$0xff] }
 0x881   : > { %2301 = vmatpush3.msra.mxu1 %v3088_v57  ;;  %2345 = vmatpush3.msra.mxu0 %v3195_v14  ;;  %v3831_v57 = vld [vmem:[#allocation7_spill] sm:$0xff]  ;;  %v3846_v14 = vld [vmem:[#allocation30_spill] sm:$0xff] }
 0x882   : > { %2302 = vmatprep.subr.mxu1 %v3094_v58  ;;  %2346 = vmatprep.subr.mxu0 %v3207_v16  ;;  %v3832_v58 = vld [vmem:[#allocation23_spill] sm:$0xff] }
 0x883   : > { %2303 = vmatpush3.msra.mxu1 %v3100_v59  ;;  %2347 = vmatpush3.msra.mxu0 %v3219_v8  ;;  %v3833_v59 = vld [vmem:[#allocation8_spill] sm:$0xff]  ;;  %v3847_v16 = vld [vmem:[#allocation15_spill] sm:$0xff] }
 0x884   : > { %2304 = vmatprep.subr.mxu1 %v3106_v60  ;;  %2348 = vmatprep.subr.mxu0 %v3231_v28  ;;  %v3834_v60 = vld [vmem:[#allocation24_spill] sm:$0xff]  ;;  %v3848_v8 = vld [vmem:[#allocation31_spill] sm:$0xff] }
 0x885   : > { %2305 = vmatpush3.msra.mxu1 %v3112_v62  ;;  %2349 = vmatpush3.msra.mxu0 %v3243_v30  ;;  %v3835_v62 = vld [vmem:[#allocation9_spill] sm:$0xff]  ;;  %v3849_v28 = vld [vmem:[#allocation16_spill] sm:$0xff] }
 0x886   : > { %2306 = vmatprep.subr.mxu1 %v3118_v63  ;;  %2350 = vmatprep.subr.mxu0 %v3255_v61  ;;  %v3836_v63 = vld [vmem:[#allocation25_spill] sm:$0xff]  ;;  %v3850_v30 = vld [vmem:[#allocation32_spill] sm:$0xff] }
 0x887   : > { %2182 = vmatmul.mubr.msk.bf16.gmra.mxu1 %vm396_vm3, %v1583_v33  ;;  %2184 = vmatmul.mubr.msk.bf16.gmra.mxu0 %vm396_vm3, %v1583_v33  ;;  %v3851_v61 = vld [vmem:[#allocation17_spill] sm:$0xff]  ;;  %vm1982_vm3 = vcmask 1040384  }
 0x888   : > { %2307 = vmatpush3.msra.mxu1 %v3124_v0  ;;  %2351 = vmatpush3.msra.mxu0 %v3267_v32  ;;  %v3837_v0 = vld [vmem:[#allocation10_spill] sm:$0xff]  ;;  %v3852_v32 = vld [vmem:[#allocation33_spill] sm:$0xff] }
 0x889   : > { %2308 = vmatprep.subr.mxu1 %v3130_v1  ;;  %2352 = vmatprep.subr.mxu0 %v3279_v46  ;;  %v3838_v1 = vld [vmem:[#allocation26_spill] sm:$0xff] }
 0x88a   : > { %2309 = vmatpush3.msra.mxu1 %v3136_v3  ;;  %2353 = vmatpush3.msra.mxu0 %v3291_v34  ;;  %v3839_v3 = vld [vmem:[#allocation11_spill] sm:$0xff]  ;;  %v3853_v46 = vld [vmem:[#allocation18_spill] sm:$0xff] }
 0x88b   : > { %2310 = vmatprep.subr.mxu1 %v3142_v4  ;;  %2354 = vmatprep.subr.mxu0 %v3303_v36  ;;  %v3840_v4 = vld [vmem:[#allocation27_spill] sm:$0xff]  ;;  %v3854_v34 = vld [vmem:[#allocation34_spill] sm:$0xff] }
 0x88c   : > { %2311 = vmatpush3.msra.mxu1 %v3148_v5  ;;  %2355 = vmatpush3.msra.mxu0 %v3315_v38  ;;  %v3841_v5 = vld [vmem:[#allocation12_spill] sm:$0xff]  ;;  %v3855_v36 = vld [vmem:[#allocation19_spill] sm:$0xff] }
 0x88d   : > { %2312 = vmatprep.subr.mxu1 %v3154_v6  ;;  %2356 = vmatprep.subr.mxu0 %v3327_v40  ;;  %v3842_v6 = vld [vmem:[#allocation28_spill] sm:$0xff]  ;;  %v3856_v38 = vld [vmem:[#allocation35_spill] sm:$0xff] }
 0x88e   : > { %2313 = vmatpush3.msra.mxu1 %v3160_v7  ;;  %2357 = vmatpush3.msra.mxu0 %v3339_v42  ;;  %v3843_v7 = vld [vmem:[#allocation13_spill] sm:$0xff]  ;;  %v3857_v40 = vld [vmem:[#allocation20_spill] sm:$0xff] }
 0x88f   : > { %2314 = vmatprep.subr.mxu1 %v3166_v9  ;;  %2358 = vmatprep.subr.mxu0 %v3351_v44  ;;  %v3844_v9 = vld [vmem:[#allocation29_spill] sm:$0xff]  ;;  %v3858_v42 = vld [vmem:[#allocation36_spill] sm:$0xff] }
 0x890   : > { %2315 = vmatpush3.msra.mxu1 %v3172_v10  ;;  %2359 = vmatpush3.msra.mxu0 %v3363_v48  ;;  %v3845_v10 = vld [vmem:[#allocation14_spill] sm:$0xff]  ;;  %v3859_v44 = vld [vmem:[#allocation21_spill] sm:$0xff] }
 0x891   : > { %2316 = vmatprep.subr.mxu1 %v3831_v57  ;;  %2360 = vmatprep.subr.mxu0 %v3832_v58  ;;  %v3860_v48 = vld [vmem:[#allocation37_spill] sm:$0xff] }
 0x892   : > { %2317 = vmatpush3.msra.mxu1 %v3833_v59  ;;  %2361 = vmatpush3.msra.mxu0 %v3834_v60 }
 0x893   : > { %2318 = vmatprep.subr.mxu1 %v3835_v62  ;;  %2362 = vmatprep.subr.mxu0 %v3836_v63 }
 0x894   : > { %2319 = vmatpush3.msra.mxu1 %v3837_v0  ;;  %2363 = vmatpush3.msra.mxu0 %v3838_v1 }
 0x895   : > { %2320 = vmatprep.subr.mxu1 %v3839_v3  ;;  %2364 = vmatprep.subr.mxu0 %v3840_v4 }
 0x896   : > { %2321 = vmatpush3.msra.mxu1 %v3841_v5  ;;  %2365 = vmatpush3.msra.mxu0 %v3842_v6 }
 0x897   : > { %2322 = vmatprep.subr.mxu1 %v3843_v7  ;;  %2366 = vmatprep.subr.mxu0 %v3844_v9 }
 0x898   : > { %2323 = vmatpush3.msra.mxu1 %v3845_v10  ;;  %2367 = vmatpush3.msra.mxu0 %v3846_v14 }
 0x899   : > { %2324 = vmatprep.subr.mxu1 %v3847_v16  ;;  %2368 = vmatprep.subr.mxu0 %v3848_v8 }
 0x89a   : > { %2325 = vmatpush3.msra.mxu1 %v3849_v28  ;;  %2369 = vmatpush3.msra.mxu0 %v3850_v30 }
 0x89b   : > { %2326 = vmatprep.subr.mxu1 %v3851_v61  ;;  %2370 = vmatprep.subr.mxu0 %v3852_v32 }
 0x89c   : > { %2327 = vmatpush3.msra.mxu1 %v3853_v46  ;;  %2371 = vmatpush3.msra.mxu0 %v3854_v34 }
 0x89d   : > { %2328 = vmatprep.subr.mxu1 %v3855_v36  ;;  %2372 = vmatprep.subr.mxu0 %v3856_v38  ;;  %v3865_v38 = vld [vmem:[#allocation6_spill] sm:$0xff] }
 0x89e   : > { %2329 = vmatpush3.msra.mxu1 %v3857_v40  ;;  %2373 = vmatpush3.msra.mxu0 %v3858_v42 }
 0x89f   : > { %2330 = vmatprep.subr.mxu1 %v3859_v44  ;;  %2374 = vmatprep.subr.mxu0 %v3860_v48 }
 0x8a0   : > { %2331 = vmatpush3.msra.mxu1 %v3861_v56  ;;  %2375 = vmatpush3.msra.mxu0 %v3862_v25 }
 0x93f   : > { %v1625_v18 = vpop.f32.mrf.mxu1  ;;  %v1678_v11 = vpop.f32.mrf.mxu0 }
 0x940   : > { %v1626_v20 = vadd.f32 %v1625_v18, %v3468_v29  ;;  %v1679_v51 = vadd.f32 %v1678_v11, %v3502_v19 }
 0x941   : > { %v1627_v49 = vpop.f32.mrf.mxu1  ;;  %v1680_v2 = vpop.f32.mrf.mxu0 }
 0x942   : > { %v1697_v26 = vmax.f32 %v1626_v20, 1e-06  ;;  %v1699_v39 = vmax.f32 %v1679_v51, 1e-06  ;;  %v1628_v35 = vadd.f32 %v1627_v49, %v3863_v12  ;;  %v1681_v24 = vadd.f32 %v1680_v2, %v3864_v53 }
 0x943   : > { %v1629_v15 = vpop.f32.mrf.mxu1  ;;  %v1682_v13 = vpop.f32.mrf.mxu0 }
 0x944   : > { %2625 = vlog2.f32 %v1697_v26  ;;  %v1698_v43 = vmax.f32 %v1628_v35, 1e-06  ;;  %v1700_v31 = vmax.f32 %v1681_v24, 1e-06  ;;  %v1630_v50 = vadd.f32 %v1629_v15, %v3468_v29 }
 0x945   : > { %2627 = vlog2.f32 %v1699_v39  ;;  %v1683_v45 = vadd.f32 %v1682_v13, %v3502_v19  ;;  %v1631_v41 = vpop.f32.mrf.mxu1  ;;  %v1684_v47 = vpop.f32.mrf.mxu0 }
 0x946   : > { %2629 = vlog2.f32 %v1698_v43  ;;  %v1701_v17 = vmax.f32 %v1630_v50, 1e-06  ;;  %v1632_v21 = vadd.f32 %v1631_v41, %v3863_v12  ;;  %v1685_v55 = vadd.f32 %v1684_v47, %v3864_v53 }
 0x947   : > { %2631 = vlog2.f32 %v1700_v31  ;;  %v1703_v22 = vmax.f32 %v1683_v45, 1e-06  ;;  %v1635_v23 = vpop.f32.mrf.mxu1  ;;  %v1688_v54 = vpop.f32.mrf.mxu0 }
 0x948   : > { %2633 = vlog2.f32 %v1701_v17  ;;  %v1702_v52 = vmax.f32 %v1632_v21, 1e-06  ;;  %v1704_v33 = vmax.f32 %v1685_v55, 1e-06  ;;  %v1636_v37 = vadd.f32 %v1635_v23, %v3468_v29 }
 0x949   : > { %2635 = vlog2.f32 %v1703_v22  ;;  %v1689_v57 = vadd.f32 %v1688_v54, %v3502_v19  ;;  %v1637_v58 = vpop.f32.mrf.mxu1  ;;  %v1690_v59 = vpop.f32.mrf.mxu0 }
 0x94a   : > { %2637 = vlog2.f32 %v1702_v52  ;;  %v1705_v60 = vmax.f32 %v1636_v37, 1e-06  ;;  %v1638_v62 = vadd.f32 %v1637_v58, %v3863_v12  ;;  %v1691_v63 = vadd.f32 %v1690_v59, %v3864_v53 }
 0x94b   : > { %2639 = vlog2.f32 %v1704_v33  ;;  %v1707_v0 = vmax.f32 %v1689_v57, 1e-06  ;;  %v1639_v1 = vpop.f32.mrf.mxu1  ;;  %v1692_v3 = vpop.f32.mrf.mxu0 }
 0x94c   : > { %2641 = vlog2.f32 %v1705_v60  ;;  %v1706_v4 = vmax.f32 %v1638_v62, 1e-06  ;;  %v1708_v5 = vmax.f32 %v1691_v63, 1e-06  ;;  %v1640_v6 = vadd.f32 %v1639_v1, %v3468_v29 }
 0x94d   : > { %2643 = vlog2.f32 %v1707_v0  ;;  %v1693_v7 = vadd.f32 %v1692_v3, %v3502_v19  ;;  %v1641_v9 = vpop.f32.mrf.mxu1  ;;  %v1694_v10 = vpop.f32.mrf.mxu0 }
 0x94e   : > { %2645 = vlog2.f32 %v1706_v4  ;;  %v1709_v14 = vmax.f32 %v1640_v6, 1e-06  ;;  %v1642_v16 = vadd.f32 %v1641_v9, %v3863_v12  ;;  %v1695_v8 = vadd.f32 %v1694_v10, %v3864_v53 }
 0x94f   : > { %2647 = vlog2.f32 %v1708_v5  ;;  %v1711_v28 = vmax.f32 %v1693_v7, 1e-06 }
 0x950   : > { %2649 = vlog2.f32 %v1709_v14  ;;  %v1710_v30 = vmax.f32 %v1642_v16, 1e-06  ;;  %v1712_v61 = vmax.f32 %v1695_v8, 1e-06 }
 0x951   : > { %v2626_v32 = vpop.eup %2625  ;;  %2651 = vlog2.f32 %v1711_v28 }
 0x952   : > { %v2628_v46 = vpop.eup %2627  ;;  %v1714_v29 = vmul.f32 0.6931472, %v2626_v32  ;;  %2653 = vlog2.f32 %v1710_v30 }
 0x953   : > { %v2630_v34 = vpop.eup %2629  ;;  %v1718_v19 = vmul.f32 0.6931472, %v2628_v46  ;;  %2655 = vlog2.f32 %v1712_v61 }
 0x954   : > { %v2632_v36 = vpop.eup %2631  ;;  %v1745_v40 = vmul.f32 %v1714_v29, %v3865_v38  ;;  %v1716_v42 = vmul.f32 0.6931472, %v2630_v34 }
 0x955   : > { %v2634_v44 = vpop.eup %2633  ;;  %v1747_v48 = vmul.f32 %v1718_v19, %v3865_v38  ;;  %v1720_v56 = vmul.f32 0.6931472, %v2632_v36 }
 0x956   : > { %v2636_v25 = vpop.eup %2635  ;;  %v1761_v18 = vmul.f32 1.442695, %v1745_v40  ;;  %v1746_v11 = vmul.f32 %v1716_v42, %v3865_v38  ;;  %v1722_v20 = vmul.f32 0.6931472, %v2634_v44 }
 0x957   : > { %v2638_v51 = vpop.eup %2637  ;;  %v1765_v49 = vmul.f32 1.442695, %v1747_v48  ;;  %v1748_v2 = vmul.f32 %v1720_v56, %v3865_v38  ;;  %v1726_v26 = vmul.f32 0.6931472, %v2636_v25 }
 0x958   : > { %v2640_v39 = vpop.eup %2639  ;;  %2657 = vpow2.f32 %v1761_v18  ;;  %v1763_v12 = vmul.f32 1.442695, %v1746_v11  ;;  %v1749_v35 = vmul.f32 %v1722_v20, %v3865_v38  ;;  %v1724_v53 = vmul.f32 0.6931472, %v2638_v51 }
 0x959   : > { %v2642_v24 = vpop.eup %2641  ;;  %2659 = vpow2.f32 %v1765_v49  ;;  %v1767_v15 = vmul.f32 1.442695, %v1748_v2  ;;  %v1751_v13 = vmul.f32 %v1726_v26, %v3865_v38  ;;  %v1728_v43 = vmul.f32 0.6931472, %v2640_v39  ;;  %v1987_v2 = vld [vmem:[%s3750_s7 + $0x18] sm:$0xff]  ;;  %v1986_v39 = vld [vmem:[%s3750_s7 + $0x10] sm:$0xff] }
 0x95a   : > { %v2644_v31 = vpop.eup %2643  ;;  %2661 = vpow2.f32 %v1763_v12  ;;  %v1769_v50 = vmul.f32 1.442695, %v1749_v35  ;;  %v1750_v45 = vmul.f32 %v1724_v53, %v3865_v38  ;;  %v1730_v41 = vmul.f32 0.6931472, %v2642_v24  ;;  %v1985_v12 = vld [vmem:[%s3750_s7 + $0x8] sm:$0xff]  ;;  %v1984_v35 = vld [vmem:[%s3750_s7] sm:$0xff] }
 0x95b   : > { %v2646_v47 = vpop.eup %2645  ;;  %2663 = vpow2.f32 %v1767_v15  ;;  %v1773_v17 = vmul.f32 1.442695, %v1751_v13  ;;  %v1752_v21 = vmul.f32 %v1728_v43, %v3865_v38  ;;  %v1734_v55 = vmul.f32 0.6931472, %v2644_v31 }
 0x95c   : > { %v2648_v22 = vpop.eup %2647  ;;  %2665 = vpow2.f32 %v1769_v50  ;;  %v1771_v23 = vmul.f32 1.442695, %v1750_v45  ;;  %v1753_v54 = vmul.f32 %v1730_v41, %v3865_v38  ;;  %v1732_v52 = vmul.f32 0.6931472, %v2646_v47 }
 0x95d   : > { %v2650_v33 = vpop.eup %2649  ;;  %2667 = vpow2.f32 %v1773_v17  ;;  %v1775_v37 = vmul.f32 1.442695, %v1752_v21  ;;  %v1755_v57 = vmul.f32 %v1734_v55, %v3865_v38  ;;  %v1736_v58 = vmul.f32 0.6931472, %v2648_v22 }
 0x95e   : > { %v2652_v59 = vpop.eup %2651  ;;  %2669 = vpow2.f32 %v1771_v23  ;;  %v1777_v60 = vmul.f32 1.442695, %v1753_v54  ;;  %v1754_v62 = vmul.f32 %v1732_v52, %v3865_v38  ;;  %v1738_v63 = vmul.f32 0.6931472, %v2650_v33 }
 0x95f   : > { %v2654_v0 = vpop.eup %2653  ;;  %2671 = vpow2.f32 %v1775_v37  ;;  %v1756_v1 = vmul.f32 %v1736_v58, %v3865_v38  ;;  %v1742_v3 = vmul.f32 0.6931472, %v2652_v59  ;;  %v1781_v5 = vmul.f32 1.442695, %v1755_v57 }
 0x960   : > { %v2656_v4 = vpop.eup %2655  ;;  %v1779_v6 = vmul.f32 1.442695, %v1754_v62  ;;  %v1757_v7 = vmul.f32 %v1738_v63, %v3865_v38  ;;  %v1740_v9 = vmul.f32 0.6931472, %v2654_v0  ;;  %2673 = vpow2.f32 %v1777_v60 }
 0x961   : > { %v1783_v10 = vmul.f32 1.442695, %v1756_v1  ;;  %v1759_v14 = vmul.f32 %v1742_v3, %v3865_v38  ;;  %v1744_v16 = vmul.f32 0.6931472, %v2656_v4  ;;  %v2763_v26 = vmov 0.0  }
 0x962   : > { %2675 = vpow2.f32 %v1779_v6  ;;  %v1785_v8 = vmul.f32 1.442695, %v1757_v7  ;;  %v1758_v28 = vmul.f32 %v1740_v9, %v3865_v38  ;;  %2433 = vmatprep.subr.mxu1 %v2763_v26  ;;  %v1384_v53 = vrot.slane %v3573_v27, 4 }
 0x963   : > { %2677 = vpow2.f32 %v1783_v10  ;;  %v1760_v30 = vmul.f32 %v1744_v16, %v3865_v38  ;;  %v1789_v61 = vmul.f32 1.442695, %v1759_v14 }
 0x964   : > { %2679 = vpow2.f32 %v1781_v5  ;;  %v1787_v32 = vmul.f32 1.442695, %v1758_v28  ;;  %v1385_v31 = vadd.f32 %v1384_v53, %v3573_v27 }
 0x965   : > { %v2658_v46 = vpop.eup %2657  ;;  %2681 = vpow2.f32 %v1785_v8  ;;  %v1791_v29 = vmul.f32 1.442695, %v1760_v30 }
 0x966   : > { %v2660_v34 = vpop.eup %2659  ;;  %2683 = vpow2.f32 %v1787_v32  ;;  %v1386_v21 = vrot.slane %v1385_v31, 2 }
 0x967   : > { %v2662_v19 = vpop.eup %2661  ;;  %2685 = vpow2.f32 %v1791_v29 }
 0x968   : > { %v2664_v36 = vpop.eup %2663  ;;  %2687 = vpow2.f32 %v1789_v61  ;;  %1857 = vmatprep.mubr.f32.mxu1 %v2662_v19  ;;  %v1387_v59 = vadd.f32 %v1386_v21, %v1385_v31 }
 0x969   : > { %v2666_v40 = vpop.eup %2665  ;;  %1942 = vmatprep.mubr.f32.mxu0 %v2664_v36  ;;  %1858 = vmatmul.mubr.f32.vlgmr.msra.gmra.mxu1 %v2658_v46 }
 0x96a   : > { %v2668_v42 = vpop.eup %2667  ;;  %1943 = vmatmul.mubr.f32.vlgmr.msra.gmra.mxu0 %v2660_v34  ;;  %2434 = vmatpush3.msra.mxu1 %v1987_v2  ;;  %v1388_v6 = vrot.slane %v1387_v59, 1 }
 0x96b   : > { %v2670_v44 = vpop.eup %2669  ;;  %2435 = vmatprep.subr.mxu1 %v2763_v26 }
 0x96c   : > { %v2672_v38 = vpop.eup %2671  ;;  %1862 = vmatprep.mubr.f32.mxu1 %v2670_v44  ;;  %2436 = vmatpush3.msra.mxu1 %v1986_v39  ;;  %v1389_v28 = vadd.f32 %v1388_v6, %v1387_v59  ;;  %v2185_v39 = vld [vmem:[%s3751_s8] ss:$0 sm:$0xff] }
 0x96d   : > { %1947 = vmatprep.mubr.f32.mxu0 %v2672_v38  ;;  %1863 = vmatmul.mubr.f32.gmra.mxu1 %v2666_v40  ;;  %v2674_v48 = vpop.eup %2673 }
 0x96e   : > { %1948 = vmatmul.mubr.f32.gmra.mxu0 %v2668_v42  ;;  %2437 = vmatprep.subr.mxu1 %v2763_v26  ;;  %v1390_v46 = vmul.f32 0.0024038462, %v1389_v28 }
 0x96f   : > { %v2676_v56 = vpop.eup %2675  ;;  %2438 = vmatpush3.msra.mxu1 %v1985_v12 }
 0x970   : > { %v2678_v25 = vpop.eup %2677  ;;  %1867 = vmatprep.mubr.f32.mxu1 %v2676_v56  ;;  %2439 = vmatprep.subr.mxu1 %v2763_v26  ;;  %2689 = vlog2.f32 %v1390_v46 }
 0x971   : > { %v2680_v18 = vpop.eup %2679  ;;  %1952 = vmatprep.mubr.f32.mxu0 %v2678_v25  ;;  %1868 = vmatmul.mubr.f32.gmra.mxu1 %v2674_v48  ;;  %v1393_v48 = vstv %s2969_s29 }
 0x972   : > { %v2682_v11 = vpop.eup %2681  ;;  %1953 = vmatmul.mubr.f32.gmra.mxu0 %v2680_v18  ;;  %2440 = vmatpush3.msra.mxu1 %v1984_v35 }
 0x973   : > { %v2684_v20 = vpop.eup %2683 }
 0x974   : > { %v2686_v51 = vpop.eup %2685  ;;  %1872 = vmatprep.mubr.f32.mxu1 %v2684_v20 }
 0x975   : > { %v2688_v49 = vpop.eup %2687  ;;  %1957 = vmatprep.mubr.f32.mxu0 %v2686_v51  ;;  %1873 = vmatmul.mubr.f32.gmra.mxu1 %v2682_v11 }
 0x976   : > { %1958 = vmatmul.mubr.f32.gmra.mxu0 %v2688_v49  ;;  %2441 = vmatprep.mubr.msk.f32.mxu1 %vm2764_vm0, %v2763_v26 }
 0x97d   : > { %v2690_v44 = vpop.eup %2689 }
 0x97e   : > { %v1392_v38 = vmul.f32 0.6931472, %v2690_v44 }
 0x980   : > { %v1394_v56 = vmul.f32 %v1393_v48, %v1392_v38 }
 0x982   : > { %v1395_v11 = vmul.f32 1.442695, %v1394_v56 }
 0xa29   : > { %v2332_v24 = vpop.f32.mrf.mxu1 }
 0xa2a   : > { %v2376_v15 = vpop.f32.mrf.mxu0 }
 0xa2b   : > { %v2333_v13 = vpop.f32.mrf.mxu1 }
 0xa2c   : > { %v2377_v43 = vpop.f32.mrf.mxu0  ;;  %v2334_v55 = vadd.f32 %v2333_v13, %v2332_v24 }
 0xa2d   : > { %v2335_v50 = vpop.f32.mrf.mxu1  ;;  %v2378_v22 = vadd.f32 %v2377_v43, %v2376_v15 }
 0xa2e   : > { %v2379_v45 = vpop.f32.mrf.mxu0 }
 0xa2f   : > { %v2336_v41 = vpop.f32.mrf.mxu1  ;;  %v1945_v60 = vadd.f32 %v2378_v22, %v2334_v55 }
 0xa30   : > { %v2337_v47 = vadd.f32 %v2336_v41, %v2335_v50  ;;  %v2380_v17 = vpop.f32.mrf.mxu0 }
 0xa31   : > { %v2381_v23 = vadd.f32 %v2380_v17, %v2379_v45  ;;  %v2338_v54 = vpop.f32.mrf.mxu1  ;;  %v1963_v7 = vsel %vm401_vm5, %v1945_v60, 0.0 }
 0xa32   : > { %v2382_v52 = vpop.f32.mrf.mxu0 }
 0xa33   : > { %v1950_v33 = vadd.f32 %v2381_v23, %v2337_v47  ;;  %v2339_v37 = vpop.f32.mrf.mxu1 }
 0xa34   : > { %v2340_v57 = vadd.f32 %v2339_v37, %v2338_v54  ;;  %v2383_v58 = vpop.f32.mrf.mxu0 }
 0xa35   : > { %v2384_v62 = vadd.f32 %v2383_v58, %v2382_v52  ;;  %v2341_v63 = vpop.f32.mrf.mxu1  ;;  %v1964_v0 = vsel %vm401_vm5, %v1950_v33, 0.0 }
 0xa36   : > { %v2385_v27 = vpop.f32.mrf.mxu0  ;;  %v1965_v14 = vadd.f32 %v1964_v0, %v1963_v7 }
 0xa37   : > { %v1955_v1 = vadd.f32 %v2384_v62, %v2340_v57  ;;  %v2342_v3 = vpop.f32.mrf.mxu1 }
 0xa38   : > { %v2343_v4 = vadd.f32 %v2342_v3, %v2341_v63  ;;  %v2386_v5 = vpop.f32.mrf.mxu0 }
 0xa39   : > { %v1966_v9 = vsel %vm401_vm5, %v1955_v1, 0.0  ;;  %v2387_v10 = vadd.f32 %v2386_v5, %v2385_v27 }
 0xa3a   : > { %v1967_v8 = vadd.f32 %v1966_v9, %v1965_v14 }
 0xa3b   : > { %v1960_v16 = vadd.f32 %v2387_v10, %v2343_v4 }
 0xa3d   : > { %v1968_v30 = vsel %vm1381_vm2, %v1960_v16, 0.0 }
 0xa3e   : > { %v1969_v61 = vadd.f32 %v1968_v30, %v1967_v8 }
 0xa40   : > { %v1970_v32 = vrot.slane %v1969_v61, 4 }
 0xa42   : > { %v1971_v29 = vadd.f32 %v1970_v32, %v1969_v61 }
 0xa44   : > { %v1972_v34 = vrot.slane %v1971_v29, 2 }
 0xa46   : > { %v1973_v19 = vadd.f32 %v1972_v34, %v1971_v29 }
 0xa48   : > { %v1974_v36 = vrot.slane %v1973_v19, 1 }
 0xa4a   : > { %v1975_v40 = vadd.f32 %v1974_v36, %v1973_v19 }
 0xa4c   : > { %v1976_v42 = vmul.f32 0.0024038462, %v1975_v40 }
 0xa4e   : > { %2691 = vlog2.f32 %v1976_v42 }
 0xa4f   : > { %2693 = vpow2.f32 %v1395_v11 }
 0xa5b   : > { %v2692_v25 = vpop.eup %2691 }
 0xa5c   : > { %v1978_v18 = vmul.f32 0.6931472, %v2692_v25  ;;  %v2694_v49 = vpop.eup %2693 }
 0xa5e   : > { %v1979_v20 = vmul.f32 %v1978_v18, %v1393_v48 }
 0xa60   : > { %v1980_v51 = vmul.f32 1.442695, %v1979_v20 }
 0xa62   : > { %2695 = vpow2.f32 %v1980_v51 }
 0xa6f   : > { %v2696_v2 = vpop.eup %2695 }
 0xa70   : > { %v1983_v26 = vsel %vm1982_vm3, %v2694_v49, %v2696_v2 }
 0xa71   : > { %2442 = vmatmul.mubr.msk.f32.vlgmr.msra.gmra.mxu1 %vm401_vm5, %v1983_v26 }
 0xb31   : > { %v2064_v12 = vpop.f32.mrf.mxu1 }
 0xb32   : > { %v2065_v35 = vadd.f32 %v2185_v39, %v2064_v12 }
 0xb33   : > { %v2443_v53 = vpop.f32.mrf.mxu1 }
 0xb34   : > { %2069 = vst.msk [vmem:[%s329_s22] sm:$0x3] %vm2068_vm6, %v2065_v35 }
 0xb35   : > { %2710 = shalt.err (!%p2707_p3)
}
 0xb36   : > { %s2711_s17 = scalar_lea.hbm %s3708_s25, 32  ;;  %s2715_s18 = scalar_lea.hbm %s3752_s9, 64 }
 0xb37   : > { %p2712_p4 = scmp.ne.s32.totalorder %s3708_s25, %s2711_s17  ;;  %p2716_p9 = scmp.lt.s32.totalorder %s3708_s25, %s3752_s9 }
 0xb38   : > { %p2717_p10 = scmp.lt.s32.totalorder %s2715_s18, %s2711_s17 }
 0xb39   : > { %p2713_p7 = pnand %p2712_p4, %p2857_p5 }
 0xb3a   : > { %p2718_p11 = por %p2717_p10, %p2716_p9 }
 0xb3b   : > { %p2714_p8 = pneg %p2713_p7 }
 0xb3d   : > { %p2719_p12 = pnand %p2718_p11, %p2714_p8 }
 0xb3f   : > { %2722 = shalt.err (!%p2719_p12)
}
 0xb40   : > { %2466 = dma.vmem_to_hbm [thread:$0]  (%p2857_p5), %s2085_s10, 32, %s3708_s25, %s2071_s26  }
 0xb41 PF: > { %p2472_p13 = scmp.ge.s32.totalorder %s2757_s14, 2  ;;  %s2096_s24 = sand.u32 1, %s2745_s11  }
 0xb42   : > { %s2097_s27 = scalar_lea.sflag [#allocation4], %s2096_s24 }
 0xb43   : > { %p2469_p0 = pnand %p2472_p13, %p2861_p6 }
 0xb45   : > { %p2470_p1 = pneg %p2469_p0 }
 0xb47   : > { %2740 = dma.done.wait (%p2470_p1), %s2097_s27, 32  }
 0xb48   : > { %2742 = vsyncadd (%p2470_p1), %s2097_s27, 4294967264  ;;  %p20_p2 = scmp.ge.s32.totalorder %s2844_s16, 4   ;;  %s3866_s11 = smov %s2749_s12 }
 0xb49   : > { %s3867_s12 = smov %s2753_s13  ;;  %s3868_s13 = smov %s2855_s19 }
 0xb4a   : > { %s3869_s14 = smov %s2844_s16  ;;  %22 = sbr.rel (!%p20_p2) target bundleno = 5 (0x5), region = 91 }
 0xb4f   :  { %2102 = vsyncpa [#allocation4], 1 }
 0xb50   :  { %2104 = vsyncpa [#allocation4 + $0x1], 1 }

</bundles_post_ra>
